<compile_context>
chip_gen: v5e
topology: v5e:2x2
jax: 0.10.0
libtpu: 0.0.40
codegen_flags: <defaults>
</compile_context>

<pallas_src>
import jax
import jax.numpy as jnp
from jax.experimental import pallas as pl
from jax.experimental.pallas import tpu as pltpu

IMG_SHAPE = (28, 28)
INPUT_SIZE = int(IMG_SHAPE[0] * IMG_SHAPE[1] / 2)   # 392 (per-branch input)
OUTPUT_SIZE = IMG_SHAPE[0] * IMG_SHAPE[1]           # 784 (full input & per-head output)
HIDDEN23 = 128                                      # fused hidden3|hidden2 width


def _round_up(n, m):
    return (n + m - 1) // m * m


def _net_kernel(x_ref,
                w23_ref, b23_ref,     # fused hidden3|hidden2 : (784,128) bf16, (1,128) f32
                w4_ref, b4_ref,       # row-scattered hidden4 : (128,32) bf16,  (1,32)  f32
                w5_ref, b5_ref,       # hidden5               : (32,64)  bf16,  (1,64)  f32
                wa6_ref, wb6_ref,     # head6 weights on h23 / h5 : (128,784), (64,784) bf16
                wa7_ref, wb7_ref,     # head7 weights on h23 / h5 : (128,784), (64,784) bf16
                b6_ref,               # shared head bias : (1,784) f32
                o6_ref, o7_ref):      # (tb,784) f32 each
    xb = x_ref[...].astype(jnp.bfloat16)                                  # (tb, 784)

    # hidden3 | hidden2 as one block-diagonal matmul:
    #   cols 0:64 = x_out3, cols 64:128 = x_out2.
    h23 = jnp.dot(xb, w23_ref[...], preferred_element_type=jnp.float32)
    h23 = jnp.maximum(h23 + b23_ref[...], 0.0)                            # (tb, 128) f32
    h23b = h23.astype(jnp.bfloat16)

    # hidden4: routing cat(x_out3[:,32:], x_out2[:,:32]) folded into w4 rows.
    h4 = jnp.dot(h23b, w4_ref[...], preferred_element_type=jnp.float32)
    h4 = jnp.maximum(h4 + b4_ref[...], 0.0).astype(jnp.bfloat16)          # (tb, 32)

    # hidden5.
    h5 = jnp.dot(h4, w5_ref[...], preferred_element_type=jnp.float32)
    h5 = jnp.maximum(h5 + b5_ref[...], 0.0).astype(jnp.bfloat16)          # (tb, 64)

    b6 = b6_ref[...]
    # hidden6 on x_in6 (routing folded into scattered weight rows).
    h6 = jnp.dot(h23b, wa6_ref[...], preferred_element_type=jnp.float32)
    h6 = h6 + jnp.dot(h5, wb6_ref[...], preferred_element_type=jnp.float32)
    o6_ref[...] = jnp.maximum(h6 + b6, 0.0)

    # hidden6 on x_in7.
    h7 = jnp.dot(h23b, wa7_ref[...], preferred_element_type=jnp.float32)
    h7 = h7 + jnp.dot(h5, wb7_ref[...], preferred_element_type=jnp.float32)
    o7_ref[...] = jnp.maximum(h7 + b6, 0.0)


def prepare_params(p):
    """One-time host-side weight restructuring (block-diag / row-scatter / bf16)."""
    f32, bf16 = jnp.float32, jnp.bfloat16

    # Fused first layer: block-diagonal [w3 | w2].
    w23 = jnp.zeros((OUTPUT_SIZE, HIDDEN23), f32)
    w23 = w23.at[:INPUT_SIZE, :64].set(p["w3"].astype(f32))
    w23 = w23.at[INPUT_SIZE:, 64:].set(p["w2"].astype(f32))
    b23 = jnp.concatenate([p["b3"], p["b2"]], axis=1).astype(f32)          # (1,128)

    # hidden4: x_in4 = cat(x_out3[:,32:], x_out2[:,:32]) = h23 cols [32:64 | 64:96].
    w4p = jnp.zeros((HIDDEN23, 32), f32)
    w4p = w4p.at[32:64, :].set(p["w4"][:32, :].astype(f32))
    w4p = w4p.at[64:96, :].set(p["w4"][32:, :].astype(f32))

    # Heads (hidden6 applied to x_in6 AND x_in7); routing folded into rows.
    #   x_in6 = cat(x_out5[:,32:], x_out2[:,32:])  -> h5[32:64], h23[96:128]
    #   x_in7 = cat(x_out3[:,:32], x_out5[:,:32])  -> h23[0:32],  h5[0:32]
    w6 = p["w6"].astype(f32)
    wa6 = jnp.zeros((HIDDEN23, OUTPUT_SIZE), f32).at[96:128, :].set(w6[32:, :])
    wb6 = jnp.zeros((64, OUTPUT_SIZE), f32).at[32:64, :].set(w6[:32, :])
    wa7 = jnp.zeros((HIDDEN23, OUTPUT_SIZE), f32).at[0:32, :].set(w6[:32, :])
    wb7 = jnp.zeros((64, OUTPUT_SIZE), f32).at[0:32, :].set(w6[32:, :])

    return {"w23": w23.astype(bf16), "b23": b23,
            "w4": w4p.astype(bf16), "b4": p["b4"].astype(f32),
            "w5": p["w5"].astype(bf16), "b5": p["b5"].astype(f32),
            "wa6": wa6.astype(bf16), "wb6": wb6.astype(bf16),
            "wa7": wa7.astype(bf16), "wb7": wb7.astype(bf16),
            "b6": p["b6"].astype(f32)}


def net_forward(x, prepped, *, tile_b=1024):
    """x: (B, 784) f32. Returns (x_out6, x_out7), each (B, 784) f32."""
    B = x.shape[0]
    tb = min(tile_b, _round_up(B, 8))
    # Ensure >=2 grid steps when the batch is big enough: lets input/output DMA
    # overlap compute and shards the "parallel" axis across both TensorCores on
    # dual-TC parts (v7x).
    if B >= 64 and B <= tb:
        tb = _round_up(pl.cdiv(B, 2), 8)
    grid = (pl.cdiv(B, tb),)   # ragged last block: OOB input rows are unused,
                               # OOB output rows are discarded (rows independent).

    def resident(arr):
        # Whole-array block, same tile every grid step -> stays VMEM-resident.
        return pl.BlockSpec(arr.shape, lambda i: (0, 0))

    weights = (prepped["w23"], prepped["b23"],
               prepped["w4"], prepped["b4"],
               prepped["w5"], prepped["b5"],
               prepped["wa6"], prepped["wb6"],
               prepped["wa7"], prepped["wb7"],
               prepped["b6"])

    in_specs = [pl.BlockSpec((tb, OUTPUT_SIZE), lambda i: (i, 0))] + \
               [resident(w) for w in weights]

    out_shape = (jax.ShapeDtypeStruct((B, OUTPUT_SIZE), jnp.float32),
                 jax.ShapeDtypeStruct((B, OUTPUT_SIZE), jnp.float32))
    out_specs = (pl.BlockSpec((tb, OUTPUT_SIZE), lambda i: (i, 0)),
                 pl.BlockSpec((tb, OUTPUT_SIZE), lambda i: (i, 0)))

    o6, o7 = pl.pallas_call(
        _net_kernel,
        out_shape=out_shape,
        grid=grid,
        in_specs=in_specs,
        out_specs=out_specs,
        compiler_params=pltpu.CompilerParams(
            dimension_semantics=("parallel",),
            vmem_limit_bytes=48 * 1024 * 1024),
    )(x, *weights)
    return o6, o7


def init_params(key):
    """Deterministic init, PyTorch-Linear style U(-1/sqrt(fan_in), 1/sqrt(fan_in)).
    Weights stored as (in_features, out_features); biases as (1, out_features)."""
    dims = {
        "2": (INPUT_SIZE, 64),
        "3": (INPUT_SIZE, 64),
        "4": (64, 32),
        "5": (32, 64),
        "6": (64, OUTPUT_SIZE),
        "7": (64, OUTPUT_SIZE),   # defined in __init__, unused in forward
    }
    params = {}
    keys = jax.random.split(key, 2 * len(dims))
    for i, (name, (fin, fout)) in enumerate(sorted(dims.items())):
        bound = 1.0 / (fin ** 0.5)
        params["w" + name] = jax.random.uniform(
            keys[2 * i], (fin, fout), jnp.float32, -bound, bound)
        params["b" + name] = jax.random.uniform(
            keys[2 * i + 1], (1, fout), jnp.float32, -bound, bound)
    return params


def net_forward_ref(x, p):
    """Pure-JAX f32 reference of the exact PyTorch forward semantics."""
    def lr(v, w, b):
        return jnp.maximum(v @ w + b, 0.0)
    x_in3, x_in2 = x[:, :INPUT_SIZE], x[:, INPUT_SIZE:]
    x_out3 = lr(x_in3, p["w3"], p["b3"])
    x_out2 = lr(x_in2, p["w2"], p["b2"])
    x_in4 = jnp.concatenate((x_out3[:, 32:], x_out2[:, :32]), axis=1)
    x_out4 = lr(x_in4, p["w4"], p["b4"])
    x_out5 = lr(x_out4, p["w5"], p["b5"])
    x_in6 = jnp.concatenate((x_out5[:, 32:], x_out2[:, 32:]), axis=1)
    x_in7 = jnp.concatenate((x_out3[:, :32], x_out5[:, :32]), axis=1)
    return lr(x_in6, p["w6"], p["b6"]), lr(x_in7, p["w6"], p["b6"])


if __name__ == "__main__":
    key = jax.random.PRNGKey(0)
    k_param, k_x = jax.random.split(key)
    params = init_params(k_param)
    prepped = prepare_params(params)

    def check(B, tag, **kw):
        x = jax.random.normal(jax.random.fold_in(k_x, tag), (B, OUTPUT_SIZE), jnp.float32)
        o6, o7 = jax.block_until_ready(net_forward(x, prepped, **kw))
        r6, r7 = net_forward_ref(x, params)
        assert o6.shape == (B, OUTPUT_SIZE) and o7.shape == (B, OUTPUT_SIZE)
        # bf16 matmul operands (f32 accumulation) -> loosened tolerance vs f32 ref.
        assert jnp.allclose(o6, r6, atol=2e-2, rtol=2e-2), f"head6 mismatch (B={B})"
        assert jnp.allclose(o7, r7, atol=2e-2, rtol=2e-2), f"head7 mismatch (B={B})"

    check(8, 0)                   # single-tile path
    check(256, 1, tile_b=128)     # multi-tile, double-buffered pipeline path
    check(200, 2)                 # ragged last block (no host-side pad), auto-split grid

    print("KERNEL_OK")
</pallas_src>

<mosaic_0001>
module attributes {stable_mosaic.version = 11 : i64} {
  func.func @_net_kernel(%arg0: i32, %arg1: memref<8x784xf32, #tpu.memory_space<vmem>>, %arg2: memref<784x128xbf16, #tpu.memory_space<vmem>>, %arg3: memref<1x128xf32, #tpu.memory_space<vmem>>, %arg4: memref<128x32xbf16, #tpu.memory_space<vmem>>, %arg5: memref<1x32xf32, #tpu.memory_space<vmem>>, %arg6: memref<32x64xbf16, #tpu.memory_space<vmem>>, %arg7: memref<1x64xf32, #tpu.memory_space<vmem>>, %arg8: memref<128x784xbf16, #tpu.memory_space<vmem>>, %arg9: memref<64x784xbf16, #tpu.memory_space<vmem>>, %arg10: memref<128x784xbf16, #tpu.memory_space<vmem>>, %arg11: memref<64x784xbf16, #tpu.memory_space<vmem>>, %arg12: memref<1x784xf32, #tpu.memory_space<vmem>>, %arg13: memref<8x784xf32, #tpu.memory_space<vmem>>, %arg14: memref<8x784xf32, #tpu.memory_space<vmem>>) attributes {dimension_semantics = [#tpu.dimension_semantics<parallel>], iteration_bounds = array<i64: 1>, scalar_prefetch = 0 : i64, scratch_operands = 0 : i64, tpu.core_type = #tpu.core_type<tc>, window_params = [{transform_indices = @transform_0, window_bounds = array<i64: 8, 784>}, {pipeline_mode = #tpu.pipeline_mode<synchronous>, transform_indices = @transform_1, window_bounds = array<i64: 784, 128>}, {pipeline_mode = #tpu.pipeline_mode<synchronous>, transform_indices = @transform_2, window_bounds = array<i64: 1, 128>}, {pipeline_mode = #tpu.pipeline_mode<synchronous>, transform_indices = @transform_3, window_bounds = array<i64: 128, 32>}, {pipeline_mode = #tpu.pipeline_mode<synchronous>, transform_indices = @transform_4, window_bounds = array<i64: 1, 32>}, {pipeline_mode = #tpu.pipeline_mode<synchronous>, transform_indices = @transform_5, window_bounds = array<i64: 32, 64>}, {pipeline_mode = #tpu.pipeline_mode<synchronous>, transform_indices = @transform_6, window_bounds = array<i64: 1, 64>}, {pipeline_mode = #tpu.pipeline_mode<synchronous>, transform_indices = @transform_7, window_bounds = array<i64: 128, 784>}, {pipeline_mode = #tpu.pipeline_mode<synchronous>, transform_indices = @transform_8, window_bounds = array<i64: 64, 784>}, {pipeline_mode = #tpu.pipeline_mode<synchronous>, transform_indices = @transform_9, window_bounds = array<i64: 128, 784>}, {pipeline_mode = #tpu.pipeline_mode<synchronous>, transform_indices = @transform_10, window_bounds = array<i64: 64, 784>}, {pipeline_mode = #tpu.pipeline_mode<synchronous>, transform_indices = @transform_11, window_bounds = array<i64: 1, 784>}, {transform_indices = @transform_12, window_bounds = array<i64: 8, 784>}, {transform_indices = @transform_13, window_bounds = array<i64: 8, 784>}]} {
    %c0 = arith.constant 0 : index
    %c0_0 = arith.constant 0 : index
    %0 = vector.load %arg1[%c0, %c0_0] : memref<8x784xf32, #tpu.memory_space<vmem>>, vector<8x784xf32>
    %1 = arith.truncf %0 : vector<8x784xf32> to vector<8x784xbf16>
    %c0_1 = arith.constant 0 : index
    %c0_2 = arith.constant 0 : index
    %2 = vector.load %arg2[%c0_1, %c0_2] : memref<784x128xbf16, #tpu.memory_space<vmem>>, vector<784x128xbf16>
    %cst = arith.constant dense<0.000000e+00> : vector<8x128xf32>
    %3 = tpu.matmul %1, %2, %cst {dimension_numbers = #tpu.dot_dimension_numbers<[1], [0], [0], [1], [0, 0, 1, 1], [], []>} : vector<8x784xbf16>, vector<784x128xbf16>, vector<8x128xf32> -> vector<8x128xf32>
    %c0_3 = arith.constant 0 : index
    %c0_4 = arith.constant 0 : index
    %4 = vector.load %arg3[%c0_3, %c0_4] : memref<1x128xf32, #tpu.memory_space<vmem>>, vector<1x128xf32>
    %5 = vector.broadcast %4 : vector<1x128xf32> to vector<8x128xf32>
    %6 = arith.addf %3, %5 : vector<8x128xf32>
    %cst_5 = arith.constant 0.000000e+00 : f32
    %7 = vector.broadcast %cst_5 : f32 to vector<8x128xf32>
    %8 = arith.maximumf %6, %7 : vector<8x128xf32>
    %9 = arith.truncf %8 : vector<8x128xf32> to vector<8x128xbf16>
    %c0_6 = arith.constant 0 : index
    %c0_7 = arith.constant 0 : index
    %10 = vector.load %arg4[%c0_6, %c0_7] : memref<128x32xbf16, #tpu.memory_space<vmem>>, vector<128x32xbf16>
    %cst_8 = arith.constant dense<0.000000e+00> : vector<8x32xf32>
    %11 = tpu.matmul %9, %10, %cst_8 {dimension_numbers = #tpu.dot_dimension_numbers<[1], [0], [0], [1], [0, 0, 1, 1], [], []>} : vector<8x128xbf16>, vector<128x32xbf16>, vector<8x32xf32> -> vector<8x32xf32>
    %c0_9 = arith.constant 0 : index
    %c0_10 = arith.constant 0 : index
    %12 = vector.load %arg5[%c0_9, %c0_10] : memref<1x32xf32, #tpu.memory_space<vmem>>, vector<1x32xf32>
    %13 = vector.broadcast %12 : vector<1x32xf32> to vector<8x32xf32>
    %14 = arith.addf %11, %13 : vector<8x32xf32>
    %cst_11 = arith.constant 0.000000e+00 : f32
    %15 = vector.broadcast %cst_11 : f32 to vector<8x32xf32>
    %16 = arith.maximumf %14, %15 : vector<8x32xf32>
    %17 = arith.truncf %16 : vector<8x32xf32> to vector<8x32xbf16>
    %c0_12 = arith.constant 0 : index
    %c0_13 = arith.constant 0 : index
    %18 = vector.load %arg6[%c0_12, %c0_13] : memref<32x64xbf16, #tpu.memory_space<vmem>>, vector<32x64xbf16>
    %cst_14 = arith.constant dense<0.000000e+00> : vector<8x64xf32>
    %19 = tpu.matmul %17, %18, %cst_14 {dimension_numbers = #tpu.dot_dimension_numbers<[1], [0], [0], [1], [0, 0, 1, 1], [], []>} : vector<8x32xbf16>, vector<32x64xbf16>, vector<8x64xf32> -> vector<8x64xf32>
    %c0_15 = arith.constant 0 : index
    %c0_16 = arith.constant 0 : index
    %20 = vector.load %arg7[%c0_15, %c0_16] : memref<1x64xf32, #tpu.memory_space<vmem>>, vector<1x64xf32>
    %21 = vector.broadcast %20 : vector<1x64xf32> to vector<8x64xf32>
    %22 = arith.addf %19, %21 : vector<8x64xf32>
    %cst_17 = arith.constant 0.000000e+00 : f32
    %23 = vector.broadcast %cst_17 : f32 to vector<8x64xf32>
    %24 = arith.maximumf %22, %23 : vector<8x64xf32>
    %25 = arith.truncf %24 : vector<8x64xf32> to vector<8x64xbf16>
    %c0_18 = arith.constant 0 : index
    %c0_19 = arith.constant 0 : index
    %26 = vector.load %arg12[%c0_18, %c0_19] : memref<1x784xf32, #tpu.memory_space<vmem>>, vector<1x784xf32>
    %c0_20 = arith.constant 0 : index
    %c0_21 = arith.constant 0 : index
    %27 = vector.load %arg8[%c0_20, %c0_21] : memref<128x784xbf16, #tpu.memory_space<vmem>>, vector<128x784xbf16>
    %cst_22 = arith.constant dense<0.000000e+00> : vector<8x784xf32>
    %28 = tpu.matmul %9, %27, %cst_22 {dimension_numbers = #tpu.dot_dimension_numbers<[1], [0], [0], [1], [0, 0, 1, 1], [], []>} : vector<8x128xbf16>, vector<128x784xbf16>, vector<8x784xf32> -> vector<8x784xf32>
    %c0_23 = arith.constant 0 : index
    %c0_24 = arith.constant 0 : index
    %29 = vector.load %arg9[%c0_23, %c0_24] : memref<64x784xbf16, #tpu.memory_space<vmem>>, vector<64x784xbf16>
    %cst_25 = arith.constant dense<0.000000e+00> : vector<8x784xf32>
    %30 = tpu.matmul %25, %29, %cst_25 {dimension_numbers = #tpu.dot_dimension_numbers<[1], [0], [0], [1], [0, 0, 1, 1], [], []>} : vector<8x64xbf16>, vector<64x784xbf16>, vector<8x784xf32> -> vector<8x784xf32>
    %31 = arith.addf %28, %30 : vector<8x784xf32>
    %32 = vector.broadcast %26 : vector<1x784xf32> to vector<8x784xf32>
    %33 = arith.addf %31, %32 : vector<8x784xf32>
    %cst_26 = arith.constant 0.000000e+00 : f32
    %34 = vector.broadcast %cst_26 : f32 to vector<8x784xf32>
    %35 = arith.maximumf %33, %34 : vector<8x784xf32>
    %c0_27 = arith.constant 0 : index
    %c0_28 = arith.constant 0 : index
    %36 = vector.load %arg13[%c0_27, %c0_28] : memref<8x784xf32, #tpu.memory_space<vmem>>, vector<8x784xf32>
    tpu.vector_store %arg13[%c0_27, %c0_28], %35 {strides = array<i32>} : memref<8x784xf32, #tpu.memory_space<vmem>>, vector<8x784xf32>,
    %c0_29 = arith.constant 0 : index
    %c0_30 = arith.constant 0 : index
    %37 = vector.load %arg10[%c0_29, %c0_30] : memref<128x784xbf16, #tpu.memory_space<vmem>>, vector<128x784xbf16>
    %cst_31 = arith.constant dense<0.000000e+00> : vector<8x784xf32>
    %38 = tpu.matmul %9, %37, %cst_31 {dimension_numbers = #tpu.dot_dimension_numbers<[1], [0], [0], [1], [0, 0, 1, 1], [], []>} : vector<8x128xbf16>, vector<128x784xbf16>, vector<8x784xf32> -> vector<8x784xf32>
    %c0_32 = arith.constant 0 : index
    %c0_33 = arith.constant 0 : index
    %39 = vector.load %arg11[%c0_32, %c0_33] : memref<64x784xbf16, #tpu.memory_space<vmem>>, vector<64x784xbf16>
    %cst_34 = arith.constant dense<0.000000e+00> : vector<8x784xf32>
    %40 = tpu.matmul %25, %39, %cst_34 {dimension_numbers = #tpu.dot_dimension_numbers<[1], [0], [0], [1], [0, 0, 1, 1], [], []>} : vector<8x64xbf16>, vector<64x784xbf16>, vector<8x784xf32> -> vector<8x784xf32>
    %41 = arith.addf %38, %40 : vector<8x784xf32>
    %42 = vector.broadcast %26 : vector<1x784xf32> to vector<8x784xf32>
    %43 = arith.addf %41, %42 : vector<8x784xf32>
    %cst_35 = arith.constant 0.000000e+00 : f32
    %44 = vector.broadcast %cst_35 : f32 to vector<8x784xf32>
    %45 = arith.maximumf %43, %44 : vector<8x784xf32>
    %c0_36 = arith.constant 0 : index
    %c0_37 = arith.constant 0 : index
    %46 = vector.load %arg14[%c0_36, %c0_37] : memref<8x784xf32, #tpu.memory_space<vmem>>, vector<8x784xf32>
    tpu.vector_store %arg14[%c0_36, %c0_37], %45 {strides = array<i32>} : memref<8x784xf32, #tpu.memory_space<vmem>>, vector<8x784xf32>,
    return
  }
  func.func @transform_0(%arg0: i32) -> (i32, i32) {
    %c0_i32 = arith.constant 0 : i32
    %c0_i32_0 = arith.constant 0 : i32
    return %arg0, %c0_i32 : i32, i32
  }
  func.func @transform_1(%arg0: i32) -> (i32, i32) {
    %c0_i32 = arith.constant 0 : i32
    %c0_i32_0 = arith.constant 0 : i32
    %c0_i32_1 = arith.constant 0 : i32
    return %c0_i32, %c0_i32_0 : i32, i32
  }
  func.func @transform_2(%arg0: i32) -> (i32, i32) {
    %c0_i32 = arith.constant 0 : i32
    %c0_i32_0 = arith.constant 0 : i32
    %c0_i32_1 = arith.constant 0 : i32
    return %c0_i32, %c0_i32_0 : i32, i32
  }
  func.func @transform_3(%arg0: i32) -> (i32, i32) {
    %c0_i32 = arith.constant 0 : i32
    %c0_i32_0 = arith.constant 0 : i32
    %c0_i32_1 = arith.constant 0 : i32
    return %c0_i32, %c0_i32_0 : i32, i32
  }
  func.func @transform_4(%arg0: i32) -> (i32, i32) {
    %c0_i32 = arith.constant 0 : i32
    %c0_i32_0 = arith.constant 0 : i32
    %c0_i32_1 = arith.constant 0 : i32
    return %c0_i32, %c0_i32_0 : i32, i32
  }
  func.func @transform_5(%arg0: i32) -> (i32, i32) {
    %c0_i32 = arith.constant 0 : i32
    %c0_i32_0 = arith.constant 0 : i32
    %c0_i32_1 = arith.constant 0 : i32
    return %c0_i32, %c0_i32_0 : i32, i32
  }
  func.func @transform_6(%arg0: i32) -> (i32, i32) {
    %c0_i32 = arith.constant 0 : i32
    %c0_i32_0 = arith.constant 0 : i32
    %c0_i32_1 = arith.constant 0 : i32
    return %c0_i32, %c0_i32_0 : i32, i32
  }
  func.func @transform_7(%arg0: i32) -> (i32, i32) {
    %c0_i32 = arith.constant 0 : i32
    %c0_i32_0 = arith.constant 0 : i32
    %c0_i32_1 = arith.constant 0 : i32
    return %c0_i32, %c0_i32_0 : i32, i32
  }
  func.func @transform_8(%arg0: i32) -> (i32, i32) {
    %c0_i32 = arith.constant 0 : i32
    %c0_i32_0 = arith.constant 0 : i32
    %c0_i32_1 = arith.constant 0 : i32
    return %c0_i32, %c0_i32_0 : i32, i32
  }
  func.func @transform_9(%arg0: i32) -> (i32, i32) {
    %c0_i32 = arith.constant 0 : i32
    %c0_i32_0 = arith.constant 0 : i32
    %c0_i32_1 = arith.constant 0 : i32
    return %c0_i32, %c0_i32_0 : i32, i32
  }
  func.func @transform_10(%arg0: i32) -> (i32, i32) {
    %c0_i32 = arith.constant 0 : i32
    %c0_i32_0 = arith.constant 0 : i32
    %c0_i32_1 = arith.constant 0 : i32
    return %c0_i32, %c0_i32_0 : i32, i32
  }
  func.func @transform_11(%arg0: i32) -> (i32, i32) {
    %c0_i32 = arith.constant 0 : i32
    %c0_i32_0 = arith.constant 0 : i32
    %c0_i32_1 = arith.constant 0 : i32
    return %c0_i32, %c0_i32_0 : i32, i32
  }
  func.func @transform_12(%arg0: i32) -> (i32, i32) {
    %c0_i32 = arith.constant 0 : i32
    %c0_i32_0 = arith.constant 0 : i32
    return %arg0, %c0_i32 : i32, i32
  }
  func.func @transform_13(%arg0: i32) -> (i32, i32) {
    %c0_i32 = arith.constant 0 : i32
    %c0_i32_0 = arith.constant 0 : i32
    return %arg0, %c0_i32 : i32, i32
  }
}

</mosaic_0001>

<bundles_post_ra>
// kernel: tpu_custom_call.1
= control target key start
LH: loop header
LB: loop body
LE: loop exit
PB: predicated region body
PF: predicated region fallthrough
CT: control target
= control target key end

     0   :  { %19 = vsyncpa [#allocation3], 0  ;;  %s4775_s0 = inlined_call_operand.vmem [shape: f32[8,784], index: 0, kind: input, shape index: {}]   ;;  %s4776_s1 = inlined_call_operand.vmem [shape: bf16[784,128], index: 1, kind: input, shape index: {}]   ;;  %s4777_s2 = inlined_call_operand.vmem [shape: f32[1,128], index: 2, kind: input, shape index: {}]   ;;  %s4778_s3 = inlined_call_operand.vmem [shape: bf16[128,32], index: 3, kind: input, shape index: {}]   ;;  %s4779_s4 = inlined_call_operand.vmem [shape: f32[1,32], index: 4, kind: input, shape index: {}]   ;;  %s4780_s5 = inlined_call_operand.vmem [shape: bf16[32,64], index: 5, kind: input, shape index: {}]   ;;  %s4781_s6 = inlined_call_operand.vmem [shape: f32[1,64], index: 6, kind: input, shape index: {}]   ;;  %s4782_s7 = inlined_call_operand.vmem [shape: bf16[128,784], index: 7, kind: input, shape index: {}]   ;;  %s4783_s8 = inlined_call_operand.vmem [shape: bf16[64,784], index: 8, kind: input, shape index: {}]   ;;  %s4784_s9 = inlined_call_operand.vmem [shape: bf16[128,784], index: 9, kind: input, shape index: {}]   ;;  %s4785_s10 = inlined_call_operand.vmem [shape: bf16[64,784], index: 10, kind: input, shape index: {}]   ;;  %s4786_s11 = inlined_call_operand.vmem [shape: f32[1,784], index: 11, kind: input, shape index: {}]   ;;  %s4787_s12 = inlined_call_operand.hbm [shape: f32[8,784], index: 12, kind: output, shape index: {0}]   ;;  %s4788_s13 = inlined_call_operand.hbm [shape: f32[8,784], index: 13, kind: output, shape index: {1}]  }
   0x1   :  { %v3120_v0 = vld [vmem:[%s4776_s1 + $0x38] sm:$0xff]  ;;  %v3119_v3 = vld [vmem:[%s4776_s1 + $0x30] sm:$0xff]  ;;  %v3118_v8 = vld [vmem:[%s4776_s1 + $0x28] sm:$0xff] }
   0x2   :  { %v3128_v1 = vld [vmem:[%s4776_s1 + $0x78] sm:$0xff]  ;;  %460 = vmatpush.bf16.msra.mxu0 %v3120_v0  ;;  %v3127_v4 = vld [vmem:[%s4776_s1 + $0x70] sm:$0xff]  ;;  %v3126_v9 = vld [vmem:[%s4776_s1 + $0x68] sm:$0xff] }
   0x3   :  { %v3136_v2 = vld [vmem:[%s4776_s1 + $0xb8] sm:$0xff]  ;;  %473 = vmatpush.bf16.msra.mxu1 %v3128_v1  ;;  %v3135_v5 = vld [vmem:[%s4776_s1 + $0xb0] sm:$0xff]  ;;  %v3134_v10 = vld [vmem:[%s4776_s1 + $0xa8] sm:$0xff] }
   0x4   :  { %486 = vmatpush.bf16.msra.mxu2 %v3136_v2  ;;  %v3144_v6 = vld [vmem:[%s4776_s1 + $0xf8] sm:$0xff]  ;;  %v3143_v7 = vld [vmem:[%s4776_s1 + $0xf0] sm:$0xff]  ;;  %v3142_v11 = vld [vmem:[%s4776_s1 + $0xe8] sm:$0xff] }
   0x5   :  { %499 = vmatpush.bf16.msra.mxu3 %v3144_v6  ;;  %v3117_v12 = vld [vmem:[%s4776_s1 + $0x20] sm:$0xff]  ;;  %v3116_v16 = vld [vmem:[%s4776_s1 + $0x18] sm:$0xff] }
   0x6   :  { %461 = vmatpush.bf16.msra.mxu0 %v3119_v3  ;;  %v3125_v13 = vld [vmem:[%s4776_s1 + $0x60] sm:$0xff]  ;;  %v3124_v17 = vld [vmem:[%s4776_s1 + $0x58] sm:$0xff] }
   0x7   :  { %474 = vmatpush.bf16.msra.mxu1 %v3127_v4  ;;  %v3133_v14 = vld [vmem:[%s4776_s1 + $0xa0] sm:$0xff]  ;;  %v3132_v18 = vld [vmem:[%s4776_s1 + $0x98] sm:$0xff] }
   0x8   :  { %487 = vmatpush.bf16.msra.mxu2 %v3135_v5  ;;  %v3141_v15 = vld [vmem:[%s4776_s1 + $0xe0] sm:$0xff]  ;;  %v3140_v19 = vld [vmem:[%s4776_s1 + $0xd8] sm:$0xff] }
   0x9   :  { %500 = vmatpush.bf16.msra.mxu3 %v3143_v7 }
   0xa   :  { %462 = vmatpush.bf16.msra.mxu0 %v3118_v8 }
   0xb   :  { %475 = vmatpush.bf16.msra.mxu1 %v3126_v9 }
   0xc   :  { %488 = vmatpush.bf16.msra.mxu2 %v3134_v10 }
   0xd   :  { %501 = vmatpush.bf16.msra.mxu3 %v3142_v11 }
   0xe   :  { %463 = vmatpush.bf16.msra.mxu0 %v3117_v12 }
   0xf   :  { %476 = vmatpush.bf16.msra.mxu1 %v3125_v13 }
  0x10   :  { %489 = vmatpush.bf16.msra.mxu2 %v3133_v14 }
  0x11   :  { %502 = vmatpush.bf16.msra.mxu3 %v3141_v15 }
  0x12   :  { %20 = vsyncpa [#allocation5], 0  ;;  %464 = vmatpush.bf16.msra.mxu0 %v3116_v16  ;;  %v3115_v20 = vld [vmem:[%s4776_s1 + $0x10] sm:$0xff]  ;;  %v3114_v24 = vld [vmem:[%s4776_s1 + $0x8] sm:$0xff]  ;;  %vm456_vm0 = vcmask 130048   ;;  %vm656_vm1 = vcmask 261120  }
  0x13   :  { %477 = vmatpush.bf16.msra.mxu1 %v3124_v17  ;;  %v3123_v21 = vld [vmem:[%s4776_s1 + $0x50] sm:$0xff]  ;;  %v3122_v25 = vld [vmem:[%s4776_s1 + $0x48] sm:$0xff]  ;;  %v3113_v27 = vld [vmem:[%s4776_s1] sm:$0xff]  ;;  %vm916_vm2 = vcmask 523264   ;;  %s2175_s25 = sshll.u32 %s4788_s13, 4  ;;  %s2176_s25 = int_to_ptr.hbm [resolvable:$true] %s2175_s25 }
  0x14   :  { %490 = vmatpush.bf16.msra.mxu2 %v3132_v18  ;;  %v3131_v22 = vld [vmem:[%s4776_s1 + $0x90] sm:$0xff]  ;;  %v3130_v26 = vld [vmem:[%s4776_s1 + $0x88] sm:$0xff]  ;;  %v3121_v29 = vld [vmem:[%s4776_s1 + $0x40] sm:$0xff] }
  0x15   :  { %503 = vmatpush.bf16.msra.mxu3 %v3140_v19  ;;  %v3139_v23 = vld [vmem:[%s4776_s1 + $0xd0] sm:$0xff]  ;;  %v3138_v28 = vld [vmem:[%s4776_s1 + $0xc8] sm:$0xff]  ;;  %v46_v30 = vld [vmem:[%s4775_s0] sm:$0xff] }
  0x16   :  { %465 = vmatpush.bf16.msra.mxu0 %v3115_v20  ;;  %v47_v31 = vld [vmem:[%s4775_s0 + $0x8] sm:$0xff]  ;;  %v3152_v32 = vld [vmem:[%s4776_s1 + $0x138] sm:$0xff]  ;;  %v3129_v34 = vld [vmem:[%s4776_s1 + $0x80] sm:$0xff]  ;;  %v53_v36 = vpack.c.bf16 %v46_v30, %v46_v30 }
  0x17   :  { %478 = vmatpush.bf16.msra.mxu1 %v3123_v21  ;;  %v3160_v33 = vld [vmem:[%s4776_s1 + $0x178] sm:$0xff]  ;;  %v48_v35 = vld [vmem:[%s4775_s0 + $0x10] sm:$0xff]  ;;  %v54_v37 = vpack.c.bf16 %v47_v31, %v47_v31  ;;  %v3137_v38 = vld [vmem:[%s4776_s1 + $0xc0] sm:$0xff] }
  0x18   :  { %491 = vmatpush.bf16.msra.mxu2 %v3131_v22  ;;  %v49_v39 = vld [vmem:[%s4775_s0 + $0x18] sm:$0xff]  ;;  %v3161_v40 = vld [vmem:[%s4776_s1 + $0x180] sm:$0xff]  ;;  %v3151_v41 = vld [vmem:[%s4776_s1 + $0x130] sm:$0xff]  ;;  %v55_v43 = vpack.c.bf16 %v48_v35, %v48_v35 }
  0x19   :  { %504 = vmatpush.bf16.msra.mxu3 %v3139_v23  ;;  %v3159_v42 = vld [vmem:[%s4776_s1 + $0x170] sm:$0xff]  ;;  %v56_v44 = vpack.c.bf16 %v49_v39, %v49_v39  ;;  %v3150_v45 = vld [vmem:[%s4776_s1 + $0x128] sm:$0xff]  ;;  %v3149_v47 = vld [vmem:[%s4776_s1 + $0x120] sm:$0xff] }
  0x1a   :  { %466 = vmatpush.bf16.msra.mxu0 %v3114_v24  ;;  %v3158_v46 = vld [vmem:[%s4776_s1 + $0x168] sm:$0xff]  ;;  %v3157_v48 = vld [vmem:[%s4776_s1 + $0x160] sm:$0xff]  ;;  %v3148_v49 = vld [vmem:[%s4776_s1 + $0x118] sm:$0xff] }
  0x1b   :  { %479 = vmatpush.bf16.msra.mxu1 %v3122_v25  ;;  %v3156_v50 = vld [vmem:[%s4776_s1 + $0x158] sm:$0xff]  ;;  %v52_v51 = vld [vmem:[%s4775_s0 + $0x30] sm:$0xff]  ;;  %v3146_v55 = vld [vmem:[%s4776_s1 + $0x108] sm:$0xff] }
  0x1c   :  { %492 = vmatpush.bf16.msra.mxu2 %v3130_v26  ;;  %v3147_v52 = vld [vmem:[%s4776_s1 + $0x110] sm:$0xff]  ;;  %v59_v54 = vpack.c.bf16 %v52_v51, %v52_v51  ;;  %v3154_v56 = vld [vmem:[%s4776_s1 + $0x148] sm:$0xff]  ;;  %v3145_v57 = vld [vmem:[%s4776_s1 + $0x100] sm:$0xff] }
  0x1d   :  { %505 = vmatpush.bf16.msra.mxu3 %v3138_v28  ;;  %v3155_v53 = vld [vmem:[%s4776_s1 + $0x150] sm:$0xff]  ;;  %v3153_v58 = vld [vmem:[%s4776_s1 + $0x140] sm:$0xff]  ;;  %v51_v60 = vld [vmem:[%s4775_s0 + $0x28] sm:$0xff] }
  0x1e   :  { %467 = vmatpush.bf16.msra.mxu0 %v3113_v27  ;;  %v50_v59 = vld [vmem:[%s4775_s0 + $0x20] sm:$0xff]  ;;  %v58_v62 = vpack.c.bf16 %v51_v60, %v51_v60  ;;  %v3169_v63 = vld [vmem:[%s4778_s3 + $0x38] sm:$0xff]  ;;  %v3168_v0 = vld [vmem:[%s4778_s3 + $0x30] sm:$0xff]  ;;  %s2164_s0 = sshll.u32 %s4787_s12, 4  ;;  %s3398_s12 = smov [#allocation4]   ;;  %s2165_s0 = int_to_ptr.hbm [resolvable:$true] %s2164_s0 }
  0x1f   :  { %480 = vmatpush.bf16.msra.mxu1 %v3121_v29  ;;  %v57_v61 = vpack.c.bf16 %v50_v59, %v50_v59  ;;  %v3167_v1 = vld [vmem:[%s4778_s3 + $0x28] sm:$0xff]  ;;  %v3166_v2 = vld [vmem:[%s4778_s3 + $0x20] sm:$0xff]  ;;  %v3165_v3 = vld [vmem:[%s4778_s3 + $0x18] sm:$0xff]  ;;  %s2173_s23 = sshll.u32 %s3398_s12, 4  ;;  %s2174_s23 = int_to_ptr.vmem [resolvable:$true] %s2173_s23 }
  0x20   :  { %493 = vmatpush.bf16.msra.mxu2 %v3129_v34  ;;  %v3164_v4 = vld [vmem:[%s4778_s3 + $0x10] sm:$0xff]  ;;  %v3163_v5 = vld [vmem:[%s4778_s3 + $0x8] sm:$0xff]  ;;  %v3162_v8 = vld [vmem:[%s4778_s3] sm:$0xff] }
  0x21   :  { %468 = vmatmul.bf16.vlgmr.msra.gmra.mxu0 %v53_v36  ;;  %506 = vmatpush.bf16.msra.mxu3 %v3137_v38  ;;  %v3342_v13 = vld [vmem:[%s4777_s2] ss:$0 sm:$0xff]  ;;  %v3171_v31 = vld [vmem:[%s4780_s5 + $0x8] sm:$0xff]  ;;  %v3254_v34 = vld [vmem:[%s4783_s8 + $0xd0] sm:$0xf0] }
  0x22   :  { %512 = vmatpush.bf16.msrb.mxu0 %v3152_v32  ;;  %481 = vmatmul.bf16.vlgmr.msra.gmra.mxu1 %v54_v37  ;;  %v3170_v32 = vld [vmem:[%s4780_s5] sm:$0xff]  ;;  %v3247_v37 = vld [vmem:[%s4783_s8 + $0x98] sm:$0xf0]  ;;  %v2473_v38 = vld [vmem:[%s4783_s8 + $0x48] sm:$0xf] }
  0x23   :  { %525 = vmatpush.bf16.msrb.mxu1 %v3160_v33  ;;  %494 = vmatmul.bf16.vlgmr.msra.gmra.mxu2 %v55_v43  ;;  %v2529_v33 = vld [vmem:[%s4783_s8 + $0xb8] sm:$0xf]  ;;  %v2501_v35 = vld [vmem:[%s4783_s8 + $0x80] sm:$0xf]  ;;  %v3246_v59 = vld [vmem:[%s4783_s8 + $0x90] sm:$0xf0] }
  0x24   :  { %545 = vmatpush.bf16.msrb.mxu2 %v3161_v40  ;;  %507 = vmatmul.bf16.vlgmr.msra.gmra.mxu3 %v56_v44  ;;  %v2530_v36 = vor.u32 %v3254_v34, %v2529_v33  ;;  %v2502_v39 = vor.u32 %v3247_v37, %v2501_v35  ;;  %v3240_v40 = vld [vmem:[%s4783_s8 + $0x60] sm:$0xf0]  ;;  %v3249_v44 = vld [vmem:[%s4783_s8 + $0xac] sm:$0xf]  ;;  %v2503_v35 = vld [vmem:[%s4783_s8 + $0x9c] sm:$0xf0] }
  0x25   :  { %621 = vmatpush.bf16.msrb.mxu3 %v3169_v63  ;;  %v3221_v60 = vld [vmem:[%s4782_s7 + $0x18c] sm:$0xf]  ;;  %v3244_v34 = vld [vmem:[%s4783_s8 + $0x84] sm:$0xf] }
  0x26   :  { %513 = vmatpush.bf16.msrb.mxu0 %v3151_v41  ;;  %v2513_v41 = vld [vmem:[%s4783_s8 + $0xa8] sm:$0xf] }
  0x27   :  { %526 = vmatpush.bf16.msrb.mxu1 %v3159_v42  ;;  %v3252_v42 = vld [vmem:[%s4783_s8 + $0xc0] sm:$0xf0] }
  0x28   :  { %666 = vmatpush.bf16.msra.mxu2 %v3171_v31  ;;  %v2514_v43 = vor.u32 %v3252_v42, %v2513_v41  ;;  %v3207_v31 = vld [vmem:[%s4782_s7 + $0x11c] sm:$0xf]  ;;  %v2506_v41 = vor.u32 %v3244_v34, %v2503_v35 }
  0x29   :  { %622 = vmatpush.bf16.msrb.mxu3 %v3168_v0  ;;  %v2457_v0 = vld [vmem:[%s4783_s8 + $0x38] sm:$0xf] }
  0x2a   :  { %514 = vmatpush.bf16.msrb.mxu0 %v3150_v45  ;;  %v2515_v45 = vld [vmem:[%s4783_s8 + $0xc4] sm:$0xf0] }
  0x2b   :  { %527 = vmatpush.bf16.msrb.mxu1 %v3158_v46  ;;  %v2521_v46 = vld [vmem:[%s4783_s8 + $0xb0] sm:$0xf] }
  0x2c   :  { %667 = vmatpush.bf16.msra.mxu2 %v3170_v32  ;;  %v2690_v32 = vld [vmem:[%s4782_s7 + $0x134] sm:$0xf0] }
  0x2d   :  { %623 = vmatpush.bf16.msrb.mxu3 %v3167_v1  ;;  %v3238_v1 = vld [vmem:[%s4783_s8 + $0x50] sm:$0xf0]  ;;  %v2693_v37 = vor.u32 %v3207_v31, %v2690_v32  ;;  %v3223_v31 = vld [vmem:[%s4782_s7 + $0x19c] sm:$0xf]  ;;  %v2762_v32 = vld [vmem:[%s4782_s7 + $0x1b4] sm:$0xf0] }
  0x2e   :  { %515 = vmatpush.bf16.msrb.mxu0 %v3149_v47  ;;  %v2518_v47 = vor.u32 %v3249_v44, %v2515_v45  ;;  %v2537_v44 = vld [vmem:[%s4783_s8 + $0xc0] sm:$0xf] }
  0x2f   :  { %528 = vmatpush.bf16.msrb.mxu1 %v3157_v48  ;;  %v3253_v48 = vld [vmem:[%s4783_s8 + $0xc8] sm:$0xf0] }
  0x30   :  { %v2522_v51 = vor.u32 %v3253_v48, %v2521_v46  ;;  %v3255_v46 = vld [vmem:[%s4783_s8 + $0xd8] sm:$0xf0]  ;;  %v2634_v48 = vld [vmem:[%s4782_s7 + $0xc4] sm:$0xf0] }
  0x31   :  { %624 = vmatpush.bf16.msrb.mxu3 %v3166_v2  ;;  %v3235_v2 = vld [vmem:[%s4783_s8 + $0x3c] sm:$0xf] }
  0x32   :  { %516 = vmatpush.bf16.msrb.mxu0 %v3148_v49  ;;  %v2445_v49 = vld [vmem:[%s4783_s8 + $0x10] sm:$0xf] }
  0x33   :  { %529 = vmatpush.bf16.msrb.mxu1 %v3156_v50  ;;  %2385 = vmatmul.msk.bf16.vlgmr.msrb.gmra.mxu2 %vm456_vm0, %v59_v54  ;;  %v3233_v50 = vld [vmem:[%s4783_s8 + $0x28] sm:$0xf0]  ;;  %v3242_v54 = vld [vmem:[%s4783_s8 + $0x74] sm:$0xf] }
  0x34   :  { %950 = vmatpush.bf16.msrb.mxu2 %v2522_v51 }
  0x35   :  { %625 = vmatpush.bf16.msrb.mxu3 %v3165_v3  ;;  %v2459_v3 = vld [vmem:[%s4783_s8 + $0x54] sm:$0xf0] }
  0x36   :  { %517 = vmatpush.bf16.msrb.mxu0 %v3147_v52  ;;  %v2485_v52 = vld [vmem:[%s4783_s8 + $0x70] sm:$0xf] }
  0x37   :  { %530 = vmatpush.bf16.msrb.mxu1 %v3155_v53  ;;  %v3245_v53 = vld [vmem:[%s4783_s8 + $0x88] sm:$0xf0] }
  0x39   :  { %626 = vmatpush.bf16.msrb.mxu3 %v3164_v4  ;;  %v2458_v4 = vor.u32 %v3238_v1, %v2457_v0  ;;  %v2475_v0 = vld [vmem:[%s4783_s8 + $0x64] sm:$0xf0]  ;;  %v2481_v1 = vld [vmem:[%s4783_s8 + $0x50] sm:$0xf] }
  0x3a   :  { %518 = vmatpush.bf16.msrb.mxu0 %v3146_v55  ;;  %v2474_v55 = vor.u32 %v3240_v40, %v2473_v38  ;;  %v3343_v38 = vld [vmem:[%s4779_s4] ss:$0 sm:$0xff] }
  0x3b   :  { %531 = vmatpush.bf16.msrb.mxu1 %v3154_v56  ;;  %v2486_v56 = vor.u32 %v3245_v53, %v2485_v52  ;;  %v2662_v40 = vld [vmem:[%s4782_s7 + $0xfc] sm:$0xf0]  ;;  %v2509_v52 = vld [vmem:[%s4783_s8 + $0x88] sm:$0xf] }
  0x3d   :  { %627 = vmatpush.bf16.msrb.mxu3 %v3163_v5  ;;  %v2465_v5 = vld [vmem:[%s4783_s8 + $0x40] sm:$0xf] }
  0x3e   :  { %519 = vmatpush.bf16.msrb.mxu0 %v3145_v57  ;;  %v2487_v57 = vld [vmem:[%s4783_s8 + $0x8c] sm:$0xf0] }
  0x3f   :  { %532 = vmatpush.bf16.msrb.mxu1 %v3153_v58  ;;  %v2493_v58 = vld [vmem:[%s4783_s8 + $0x78] sm:$0xf] }
  0x40   :  { %v2494_v63 = vor.u32 %v3246_v59, %v2493_v58 }
  0x41   :  { %520 = vmatmul.bf16.vlgmr.msrb.gmra.mxu0 %v57_v61  ;;  %628 = vmatpush.bf16.msrb.mxu3 %v3162_v8  ;;  %v2746_v61 = vld [vmem:[%s4782_s7 + $0x1a4] sm:$0xf0]  ;;  %v3214_v8 = vld [vmem:[%s4782_s7 + $0x154] sm:$0xf] }
  0x42   :  { %533 = vmatmul.bf16.vlgmr.msrb.gmra.mxu1 %v58_v62  ;;  %976 = vmatpush.bf16.msra.mxu0 %v2530_v36  ;;  %v2490_v62 = vor.u32 %v3242_v54, %v2487_v57  ;;  %v3248_v54 = vld [vmem:[%s4783_s8 + $0xa0] sm:$0xf0] }
  0x43   :  { %937 = vmatpush.bf16.msra.mxu1 %v2518_v47  ;;  %951 = vmatpush.bf16.msrb.mxu2 %v2494_v63  ;;  %v3193_v47 = vld [vmem:[%s4782_s7 + $0xac] sm:$0xf]  ;;  %v2510_v58 = vor.u32 %v3248_v54, %v2509_v52  ;;  %v3211_v54 = vld [vmem:[%s4782_s7 + $0x138] sm:$0xf0] }
  0x44   :  { %v2637_v51 = vor.u32 %v3193_v47, %v2634_v48 }
  0x45   :  { %924 = vmatpush.bf16.msra.mxu3 %v2514_v43 }
  0x46   :  { %977 = vmatpush.bf16.msra.mxu0 %v2502_v39  ;;  %v3200_v39 = vld [vmem:[%s4782_s7 + $0xe4] sm:$0xf] }
  0x47   :  { %938 = vmatpush.bf16.msra.mxu1 %v2490_v62  ;;  %v2665_v43 = vor.u32 %v3200_v39, %v2662_v40  ;;  %v3237_v62 = vld [vmem:[%s4783_s8 + $0x4c] sm:$0xf]  ;;  %v2765_v39 = vor.u32 %v3223_v31, %v2762_v32  ;;  %v2724_v40 = vld [vmem:[%s4782_s7 + $0x158] sm:$0xf]  ;;  %v2622_v31 = vld [vmem:[%s4782_s7 + $0x9c] sm:$0xf0] }
  0x49   :  { %925 = vmatpush.bf16.msra.mxu3 %v2486_v56  ;;  %v2606_v56 = vld [vmem:[%s4782_s7 + $0x8c] sm:$0xf0] }
  0x4a   :  { %978 = vmatpush.bf16.msra.mxu0 %v2474_v55  ;;  %v3186_v55 = vld [vmem:[%s4782_s7 + $0x74] sm:$0xf] }
  0x4b   :  { %v2609_v59 = vor.u32 %v3186_v55, %v2606_v56  ;;  %v3208_v55 = vld [vmem:[%s4782_s7 + $0x124] sm:$0xf]  ;;  %v2698_v56 = vld [vmem:[%s4782_s7 + $0x13c] sm:$0xf0] }
  0x4d   :  { %926 = vmatpush.bf16.msra.mxu3 %v2458_v4 }
  0x9e   :  { %v469_v6 = vpop.f32.mrf.mxu0 }
  0x9f   :  { %v482_v7 = vpop.f32.mrf.mxu1  ;;  %v470_v14 = vadd.f32 %v3342_v13, %v469_v6  ;;  %v3239_v6 = vld [vmem:[%s4783_s8 + $0x58] sm:$0xf0]  ;;  %v2749_v13 = vor.u32 %v3221_v60, %v2746_v61  ;;  %v3236_v60 = vld [vmem:[%s4783_s8 + $0x44] sm:$0xf]  ;;  %v2467_v61 = vld [vmem:[%s4783_s8 + $0x5c] sm:$0xf0] }
  0xa0   :  { %v2470_v63 = vor.u32 %v3236_v60, %v2467_v61  ;;  %v2660_v61 = vld [vmem:[%s4782_s7 + $0xe0] sm:$0xf] }
  0xa1   :  { %v483_v17 = vadd.f32 %v482_v7, %v470_v14  ;;  %v2446_v7 = vor.u32 %v3233_v50, %v2445_v49  ;;  %v2466_v14 = vor.u32 %v3239_v6, %v2465_v5  ;;  %v2538_v50 = vor.u32 %v3255_v46, %v2537_v44  ;;  %v3179_v5 = vld [vmem:[%s4782_s7 + $0x3c] sm:$0xf]  ;;  %v2578_v6 = vld [vmem:[%s4782_s7 + $0x54] sm:$0xf0]  ;;  %v3216_v44 = vld [vmem:[%s4782_s7 + $0x164] sm:$0xf] }
  0xa3   :  { %979 = vmatpush.bf16.msra.mxu0 %v2446_v7  ;;  %952 = vmatpush.bf16.msrb.mxu2 %v2466_v14  ;;  %v2581_v7 = vor.u32 %v3179_v5, %v2578_v6  ;;  %v3234_v14 = vld [vmem:[%s4783_s8 + $0x30] sm:$0xf0]  ;;  %v2678_v6 = vld [vmem:[%s4782_s7 + $0x10c] sm:$0xf0] }
  0xa4   :  { %v3202_v5 = vld [vmem:[%s4782_s7 + $0xf4] sm:$0xf] }
  0xa6   :  { %v471_v9 = vpop.f32.mrf.mxu0  ;;  %v495_v11 = vpop.f32.mrf.mxu2 }
  0xa7   :  { %v484_v10 = vpop.f32.mrf.mxu1  ;;  %v508_v12 = vpop.f32.mrf.mxu3  ;;  %v496_v18 = vadd.f32 %v495_v11, %v483_v17  ;;  %v2718_v9 = vld [vmem:[%s4782_s7 + $0x16c] sm:$0xf0]  ;;  %v2429_v11 = vld [vmem:[%s4783_s8] sm:$0xf]  ;;  %v2437_v17 = vld [vmem:[%s4783_s8 + $0x8] sm:$0xf]  ;;  %1312 = vmatpush.bf16.msrb.mxu0 %v2749_v13 }
  0xa8   :  { %v2462_v10 = vor.u32 %v3235_v2, %v2459_v3  ;;  %v3241_v2 = vld [vmem:[%s4783_s8 + $0x68] sm:$0xf0]  ;;  %v2478_v3 = vor.u32 %v3237_v62, %v2475_v0  ;;  %v2453_v13 = vld [vmem:[%s4783_s8 + $0x18] sm:$0xf]  ;;  %v3203_v62 = vld [vmem:[%s4782_s7 + $0xf8] sm:$0xf0] }
  0xa9   :  { %v509_v20 = vadd.f32 %v508_v12, %v496_v18  ;;  %v3231_v12 = vld [vmem:[%s4783_s8 + $0x18] sm:$0xf0]  ;;  %v3232_v18 = vld [vmem:[%s4783_s8 + $0x20] sm:$0xf0]  ;;  %v2482_v4 = vor.u32 %v3241_v2, %v2481_v1  ;;  %v2668_v1 = vld [vmem:[%s4782_s7 + $0xe8] sm:$0xf] }
  0xaa   :  { %939 = vmatpush.bf16.msra.mxu1 %v2462_v10  ;;  %v3230_v10 = vld [vmem:[%s4783_s8 + $0x14] sm:$0xf]  ;;  %v3204_v2 = vld [vmem:[%s4782_s7 + $0x100] sm:$0xf0] }
  0xae   :  { %v497_v15 = vpop.f32.mrf.mxu2 }
  0xaf   :  { %v510_v16 = vpop.f32.mrf.mxu3  ;;  %v3228_v15 = vld [vmem:[%s4783_s8 + $0x4] sm:$0xf] }
  0xb0   :  { %v2431_v16 = vld [vmem:[%s4783_s8 + $0x1c] sm:$0xf0] }
  0xb6   :  { %v547_v19 = vpop.f32.mrf.mxu2 }
  0xbe   :  { %v521_v21 = vpop.f32.mrf.mxu0  ;;  %v549_v25 = vpop.f32.mrf.mxu2 }
  0xbf   :  { %v534_v22 = vpop.f32.mrf.mxu1  ;;  %v522_v23 = vadd.f32 %v521_v21, %v509_v20  ;;  %v2523_v20 = vld [vmem:[%s4783_s8 + $0xcc] sm:$0xf0]  ;;  %v2430_v21 = vor.u32 %v3231_v12, %v2429_v11 }
  0xc0   :  { %v2447_v12 = vld [vmem:[%s4783_s8 + $0x2c] sm:$0xf0] }
  0xc1   :  { %v535_v24 = vadd.f32 %v534_v22, %v522_v23  ;;  %v3251_v22 = vld [vmem:[%s4783_s8 + $0xbc] sm:$0xf]  ;;  %v2531_v23 = vld [vmem:[%s4783_s8 + $0xd4] sm:$0xf0]  ;;  %927 = vmatpush.bf16.msra.mxu3 %v2430_v21 }
  0xc2   :  { %v2534_v33 = vor.u32 %v3251_v22, %v2531_v23  ;;  %v2744_v23 = vld [vmem:[%s4782_s7 + $0x188] sm:$0xf] }
  0xc3   :  { %v548_v26 = vadd.f32 %v547_v19, %v535_v24  ;;  %v3250_v19 = vld [vmem:[%s4783_s8 + $0xb4] sm:$0xf]  ;;  %v2434_v24 = vor.u32 %v3228_v15, %v2431_v16  ;;  %v2450_v15 = vor.u32 %v3230_v10, %v2447_v12  ;;  %v2454_v16 = vor.u32 %v3234_v14, %v2453_v13  ;;  %v3196_v10 = vld [vmem:[%s4782_s7 + $0xc0] sm:$0xf0]  ;;  %v2640_v13 = vld [vmem:[%s4782_s7 + $0xb0] sm:$0xf] }
  0xc4   :  { %v2526_v25 = vor.u32 %v3250_v19, %v2523_v20  ;;  %v3344_v20 = vld [vmem:[%s4781_s6] ss:$0 sm:$0xff]  ;;  %v2681_v12 = vor.u32 %v3202_v5, %v2678_v6  ;;  %v3197_v14 = vld [vmem:[%s4782_s7 + $0xc8] sm:$0xf0] }
  0xc5   :  { %v551_v27 = vmax.f32 %v548_v26, 0.0  ;;  %v2721_v26 = vor.u32 %v3214_v8, %v2718_v9  ;;  %940 = vmatpush.bf16.msra.mxu1 %v2434_v24  ;;  %v3229_v8 = vld [vmem:[%s4783_s8 + $0xc] sm:$0xf]  ;;  %v2439_v9 = vld [vmem:[%s4783_s8 + $0x24] sm:$0xf0] }
  0xc6   :  { %v523_v28 = vpop.f32.mrf.mxu0  ;;  %v2442_v11 = vor.u32 %v3229_v8, %v2439_v9  ;;  %v3224_v24 = vld [vmem:[%s4782_s7 + $0x1a0] sm:$0xf0]  ;;  %v2669_v8 = vor.u32 %v3204_v2, %v2668_v1  ;;  %v2632_v9 = vld [vmem:[%s4782_s7 + $0xa8] sm:$0xf]  ;;  %v3334_v1 = vld [vmem:[%s4785_s10 + $0xb4] sm:$0xf] }
  0xc7   :  { %v536_v29 = vpop.f32.mrf.mxu1  ;;  %v3665_v30 = vpack.c.bf16 %v551_v27, %v551_v27  ;;  %v2438_v27 = vor.u32 %v3232_v18, %v2437_v17  ;;  %v3243_v28 = vld [vmem:[%s4783_s8 + $0x7c] sm:$0xf]  ;;  %1313 = vmatpush.bf16.msrb.mxu0 %v2721_v26  ;;  %v3172_v17 = vld [vmem:[%s4782_s7 + $0x4] sm:$0xf]  ;;  %v2550_v18 = vld [vmem:[%s4782_s7 + $0x1c] sm:$0xf0]  ;;  %v2745_v34 = vor.u32 %v3224_v24, %v2744_v23 }
  0xc8   :  { %v2495_v29 = vld [vmem:[%s4783_s8 + $0x94] sm:$0xf0]  ;;  %v2553_v19 = vor.u32 %v3172_v17, %v2550_v18  ;;  %v3225_v26 = vld [vmem:[%s4782_s7 + $0x1a8] sm:$0xf0]  ;;  %v3195_v17 = vld [vmem:[%s4782_s7 + $0xbc] sm:$0xf] }
  0xc9   :  { %629 = vmatmul.bf16.vlgmr.msrb.gmra.mxu3 %v3665_v30  ;;  %v2498_v36 = vor.u32 %v3243_v28, %v2495_v29  ;;  %953 = vmatpush.bf16.msrb.mxu2 %v2438_v27  ;;  %v3222_v27 = vld [vmem:[%s4782_s7 + $0x194] sm:$0xf]  ;;  %v2754_v28 = vld [vmem:[%s4782_s7 + $0x1ac] sm:$0xf0]  ;;  %v2650_v18 = vld [vmem:[%s4782_s7 + $0xd4] sm:$0xf0] }
  0xca   :  { %963 = vmatpush.bf16.msrb.mxu3 %v2526_v25  ;;  %989 = vmatpush.bf16.msrb.mxu1 %v2534_v33  ;;  %v2752_v25 = vld [vmem:[%s4782_s7 + $0x190] sm:$0xf]  ;;  %v2653_v24 = vor.u32 %v3195_v17, %v2650_v18 }
  0xcb   :  { %1314 = vmatpush.bf16.msrb.mxu0 %v2693_v37  ;;  %v2753_v35 = vor.u32 %v3225_v26, %v2752_v25  ;;  %v3217_v37 = vld [vmem:[%s4782_s7 + $0x168] sm:$0xf0]  ;;  %v2612_v25 = vld [vmem:[%s4782_s7 + $0x78] sm:$0xf]  ;;  %v3190_v26 = vld [vmem:[%s4782_s7 + $0x90] sm:$0xf0] }
  0xcc   :  { %v2866_v2 = vld [vmem:[%s4785_s10 + $0xcc] sm:$0xf0] }
  0xce   :  { %964 = vmatpush.bf16.msrb.mxu3 %v2498_v36  ;;  %990 = vmatpush.bf16.msrb.mxu1 %v2506_v41  ;;  %v2716_v36 = vld [vmem:[%s4782_s7 + $0x150] sm:$0xf]  ;;  %v3218_v41 = vld [vmem:[%s4782_s7 + $0x170] sm:$0xf0] }
  0xcf   :  { %1315 = vmatpush.bf16.msrb.mxu0 %v2665_v43  ;;  %v2726_v43 = vld [vmem:[%s4782_s7 + $0x174] sm:$0xf0]  ;;  %v2717_v47 = vor.u32 %v3217_v37, %v2716_v36  ;;  %v2725_v48 = vor.u32 %v3218_v41, %v2724_v40  ;;  %v3182_v36 = vld [vmem:[%s4782_s7 + $0x50] sm:$0xf0]  ;;  %v3183_v40 = vld [vmem:[%s4782_s7 + $0x58] sm:$0xf0] }
  0xd0   :  { %v3180_v41 = vld [vmem:[%s4782_s7 + $0x44] sm:$0xf] }
  0xd2   :  { %965 = vmatpush.bf16.msrb.mxu3 %v2470_v63  ;;  %991 = vmatpush.bf16.msrb.mxu1 %v2478_v3  ;;  %v2701_v63 = vor.u32 %v3208_v55, %v2698_v56  ;;  %v3201_v3 = vld [vmem:[%s4782_s7 + $0xec] sm:$0xf]  ;;  %v3174_v55 = vld [vmem:[%s4782_s7 + $0x14] sm:$0xf]  ;;  %v2566_v56 = vld [vmem:[%s4782_s7 + $0x2c] sm:$0xf0] }
  0xd3   :  { %1316 = vmatpush.bf16.msrb.mxu0 %v2637_v51 }
  0xd6   :  { %966 = vmatpush.bf16.msrb.mxu3 %v2442_v11  ;;  %992 = vmatpush.bf16.msrb.mxu1 %v2450_v15  ;;  %v3194_v15 = vld [vmem:[%s4782_s7 + $0xb4] sm:$0xf] }
  0xd7   :  { %1317 = vmatpush.bf16.msrb.mxu0 %v2609_v59 }
  0xdb   :  { %1318 = vmatpush.bf16.msrb.mxu0 %v2581_v7  ;;  %v2661_v7 = vor.u32 %v3203_v62, %v2660_v61  ;;  %v2856_v61 = vld [vmem:[%s4785_s10 + $0xa8] sm:$0xf] }
  0xdf   :  { %1319 = vmatpush.bf16.msrb.mxu0 %v2553_v19  ;;  %v2633_v19 = vor.u32 %v3196_v10, %v2632_v9  ;;  %v2869_v10 = vor.u32 %v3334_v1, %v2866_v2  ;;  %v2628_v1 = vld [vmem:[%s4782_s7 + $0x88] sm:$0xf]  ;;  %v3192_v2 = vld [vmem:[%s4782_s7 + $0xa0] sm:$0xf0] }
 0x14c   :  { %v630_v42 = vpop.f32.mrf.mxu3 }
 0x14d   :  { %v631_v45 = vadd.f32 %v3343_v38, %v630_v42  ;;  %v2757_v38 = vor.u32 %v3222_v27, %v2754_v28  ;;  %v3215_v42 = vld [vmem:[%s4782_s7 + $0x15c] sm:$0xf]  ;;  %v2614_v28 = vld [vmem:[%s4782_s7 + $0x94] sm:$0xf0] }
 0x14e   :  { %v2729_v51 = vor.u32 %v3215_v42, %v2726_v43  ;;  %v3187_v27 = vld [vmem:[%s4782_s7 + $0x7c] sm:$0xf]  ;;  %v2586_v42 = vld [vmem:[%s4782_s7 + $0x5c] sm:$0xf0]  ;;  %v3181_v43 = vld [vmem:[%s4782_s7 + $0x4c] sm:$0xf] }
 0x14f   :  { %v634_v49 = vmax.f32 %v631_v45, 0.0  ;;  %v2734_v45 = vld [vmem:[%s4782_s7 + $0x17c] sm:$0xf0]  ;;  %v2617_v37 = vor.u32 %v3187_v27, %v2614_v28  ;;  %v3320_v27 = vld [vmem:[%s4785_s10 + $0x44] sm:$0xf] }
 0x150   :  { %v2737_v52 = vor.u32 %v3216_v44, %v2734_v45  ;;  %v2594_v44 = vld [vmem:[%s4782_s7 + $0x64] sm:$0xf0]  ;;  %v2548_v45 = vld [vmem:[%s4782_s7] sm:$0xf] }
 0x151   :  { %v635_v53 = vpack.c.bf16 %v634_v49, %v634_v49  ;;  %v2688_v49 = vld [vmem:[%s4782_s7 + $0x118] sm:$0xf]  ;;  %v2810_v28 = vld [vmem:[%s4785_s10 + $0x5c] sm:$0xf0] }
 0x153   :  { %2426 = vmatmul.msk.bf16.vlgmr.msra.gmra.mxu2 %vm656_vm1, %v635_v53  ;;  %v2696_v53 = vld [vmem:[%s4782_s7 + $0x120] sm:$0xf] }
 0x154   :  { %v632_v57 = vpop.f32.mrf.mxu3  ;;  %1002 = vmatpush.bf16.msra.mxu2 %v2538_v50  ;;  %v3210_v50 = vld [vmem:[%s4782_s7 + $0x130] sm:$0xf0]  ;;  %v2697_v60 = vor.u32 %v3211_v54, %v2696_v53  ;;  %v3173_v53 = vld [vmem:[%s4782_s7 + $0xc] sm:$0xf]  ;;  %v2558_v54 = vld [vmem:[%s4782_s7 + $0x24] sm:$0xf0] }
 0x155   :  { %v3209_v57 = vld [vmem:[%s4782_s7 + $0x12c] sm:$0xf]  ;;  %v2689_v59 = vor.u32 %v3210_v50, %v2688_v49  ;;  %v2556_v49 = vld [vmem:[%s4782_s7 + $0x8] sm:$0xf]  ;;  %v3176_v50 = vld [vmem:[%s4782_s7 + $0x20] sm:$0xf0] }
 0x158   :  { %1003 = vmatpush.bf16.msra.mxu2 %v2510_v58  ;;  %v2706_v58 = vld [vmem:[%s4782_s7 + $0x144] sm:$0xf0] }
 0x159   :  { %v2709_v0 = vor.u32 %v3209_v57, %v2706_v58  ;;  %v2760_v57 = vld [vmem:[%s4782_s7 + $0x198] sm:$0xf]  ;;  %v3226_v58 = vld [vmem:[%s4782_s7 + $0x1b0] sm:$0xf0] }
 0x15a   :  { %v2761_v5 = vor.u32 %v3226_v58, %v2760_v57  ;;  %v3326_v57 = vld [vmem:[%s4785_s10 + $0x74] sm:$0xf]  ;;  %v2830_v58 = vld [vmem:[%s4785_s10 + $0x8c] sm:$0xf0] }
 0x15c   :  { %1004 = vmatpush.bf16.msra.mxu2 %v2482_v4  ;;  %v2670_v4 = vld [vmem:[%s4782_s7 + $0x104] sm:$0xf0] }
 0x15d   :  { %v2673_v11 = vor.u32 %v3201_v3, %v2670_v4  ;;  %v2561_v3 = vor.u32 %v3173_v53, %v2558_v54  ;;  %v2569_v4 = vor.u32 %v3174_v55, %v2566_v56  ;;  %v2656_v53 = vld [vmem:[%s4782_s7 + $0xc0] sm:$0xf]  ;;  %v3199_v54 = vld [vmem:[%s4782_s7 + $0xd8] sm:$0xf0] }
 0x160   :  { %1005 = vmatpush.bf16.msra.mxu2 %v2454_v16  ;;  %v2642_v16 = vld [vmem:[%s4782_s7 + $0xcc] sm:$0xf0] }
 0x161   :  { %v2645_v23 = vor.u32 %v3194_v15, %v2642_v16  ;;  %v3327_v15 = vld [vmem:[%s4785_s10 + $0x7c] sm:$0xf]  ;;  %v2838_v16 = vld [vmem:[%s4785_s10 + $0x94] sm:$0xf0] }
 0x1d6   :  { %v669_v21 = vpop.f32.mrf.mxu2 }
 0x1d7   :  { %v670_v22 = vadd.f32 %v3344_v20, %v669_v21  ;;  %v2641_v20 = vor.u32 %v3197_v14, %v2640_v13  ;;  %v2604_v21 = vld [vmem:[%s4782_s7 + $0x70] sm:$0xf]  ;;  %v3329_v14 = vld [vmem:[%s4785_s10 + $0x88] sm:$0xf0] }
 0x1d8   :  { %v2828_v13 = vld [vmem:[%s4785_s10 + $0x70] sm:$0xf] }
 0x1d9   :  { %v673_v29 = vmax.f32 %v670_v22, 0.0  ;;  %v3189_v22 = vld [vmem:[%s4782_s7 + $0x88] sm:$0xf0] }
 0x1da   :  { %v2605_v32 = vor.u32 %v3189_v22, %v2604_v21  ;;  %v2829_v21 = vor.u32 %v3329_v14, %v2828_v13  ;;  %v2841_v22 = vor.u32 %v3327_v15, %v2838_v16  ;;  %v2600_v13 = vld [vmem:[%s4782_s7 + $0x50] sm:$0xf]  ;;  %v3185_v14 = vld [vmem:[%s4782_s7 + $0x68] sm:$0xf0] }
 0x1db   :  { %v3920_v33 = vpack.c.bf16 %v673_v29, %v673_v29  ;;  %v3188_v29 = vld [vmem:[%s4782_s7 + $0x84] sm:$0xf] }
 0x1dd   :  { %2539 = vmatmul.msk.bf16.vlgmr.msra.gmra.mxu3 %vm916_vm2, %v3920_v33  ;;  %2540 = vmatmul.msk.bf16.vlgmr.msra.gmra.mxu1 %vm916_vm2, %v3920_v33 }
 0x1de   :  { %2541 = vmatmul.msk.bf16.vlgmr.msrb.gmra.mxu2 %vm916_vm2, %v3920_v33  ;;  %2543 = vmatmul.msk.bf16.vlgmr.msra.gmra.mxu0 %vm916_vm2, %v3920_v33  ;;  %v671_v46 = vpop.f32.mrf.mxu2 }
 0x1df   :  { %1299 = vmatpush.bf16.msra.mxu3 %v2745_v34  ;;  %1325 = vmatpush.bf16.msra.mxu1 %v2753_v35  ;;  %v2613_v34 = vor.u32 %v3190_v26, %v2612_v25  ;;  %v2576_v35 = vld [vmem:[%s4782_s7 + $0x38] sm:$0xf]  ;;  %v3322_v26 = vld [vmem:[%s4785_s10 + $0x50] sm:$0xf0] }
 0x1e0   :  { %1338 = vmatpush.bf16.msrb.mxu2 %v2757_v38  ;;  %1364 = vmatpush.bf16.msra.mxu0 %v2765_v39  ;;  %v2625_v38 = vor.u32 %v3188_v29, %v2622_v31  ;;  %v2584_v39 = vld [vmem:[%s4782_s7 + $0x40] sm:$0xf]  ;;  %v2577_v46 = vor.u32 %v3182_v36, %v2576_v35  ;;  %v2800_v25 = vld [vmem:[%s4785_s10 + $0x38] sm:$0xf] }
 0x1e1   :  { %v2684_v35 = vld [vmem:[%s4782_s7 + $0xf8] sm:$0xf]  ;;  %v2801_v36 = vor.u32 %v3322_v26, %v2800_v25  ;;  %v2564_v25 = vld [vmem:[%s4782_s7 + $0x10] sm:$0xf]  ;;  %v3177_v26 = vld [vmem:[%s4782_s7 + $0x28] sm:$0xf0] }
 0x1e3   :  { %1300 = vmatpush.bf16.msra.mxu3 %v2717_v47  ;;  %1326 = vmatpush.bf16.msra.mxu1 %v2725_v48  ;;  %v2585_v47 = vor.u32 %v3183_v40, %v2584_v39  ;;  %v3175_v48 = vld [vmem:[%s4782_s7 + $0x18] sm:$0xf0]  ;;  %v2772_v39 = vld [vmem:[%s4785_s10] sm:$0xf] }
 0x1e4   :  { %1339 = vmatpush.bf16.msrb.mxu2 %v2729_v51  ;;  %1365 = vmatpush.bf16.msra.mxu0 %v2737_v52  ;;  %v2589_v51 = vor.u32 %v3180_v41, %v2586_v42  ;;  %v2597_v52 = vor.u32 %v3181_v43, %v2594_v44  ;;  %v2549_v62 = vor.u32 %v3175_v48, %v2548_v45  ;;  %v3315_v40 = vld [vmem:[%s4785_s10 + $0x18] sm:$0xf0]  ;;  %v3313_v41 = vld [vmem:[%s4785_s10 + $0xc] sm:$0xf]  ;;  %v2782_v42 = vld [vmem:[%s4785_s10 + $0x24] sm:$0xf0] }
 0x1e5   :  { %v3333_v43 = vld [vmem:[%s4785_s10 + $0xac] sm:$0xf]  ;;  %v2858_v44 = vld [vmem:[%s4785_s10 + $0xc4] sm:$0xf0] }
 0x1e6   :  { %v3087_v45 = vld [vmem:[%s4784_s9 + $0x188] sm:$0xf]  ;;  %v2861_v55 = vor.u32 %v3333_v43, %v2858_v44  ;;  %v2846_v43 = vld [vmem:[%s4785_s10 + $0x9c] sm:$0xf0] }
 0x1e7   :  { %1301 = vmatpush.bf16.msra.mxu3 %v2689_v59  ;;  %1327 = vmatpush.bf16.msra.mxu1 %v2697_v60  ;;  %v2768_v59 = vld [vmem:[%s4782_s7 + $0x1a0] sm:$0xf]  ;;  %v3227_v60 = vld [vmem:[%s4782_s7 + $0x1b8] sm:$0xf0] }
 0x1e8   :  { %1340 = vmatpush.bf16.msrb.mxu2 %v2701_v63  ;;  %1366 = vmatpush.bf16.msra.mxu0 %v2709_v0  ;;  %v2557_v63 = vor.u32 %v3176_v50, %v2556_v49  ;;  %v3336_v0 = vld [vmem:[%s4785_s10 + $0xc0] sm:$0xf0]  ;;  %v2769_v6 = vor.u32 %v3227_v60, %v2768_v59  ;;  %v2648_v49 = vld [vmem:[%s4782_s7 + $0xb8] sm:$0xf]  ;;  %v2773_v50 = vor.u32 %v3315_v40, %v2772_v39  ;;  %v3059_v59 = vld [vmem:[%s4784_s9 + $0x150] sm:$0xf] }
 0x1e9   :  { %v2857_v9 = vor.u32 %v3336_v0, %v2856_v61  ;;  %v3301_v60 = vld [vmem:[%s4784_s9 + $0x168] sm:$0xf0]  ;;  %v3191_v0 = vld [vmem:[%s4782_s7 + $0x98] sm:$0xf0]  ;;  %v3280_v39 = vld [vmem:[%s4784_s9 + $0xc0] sm:$0xf0]  ;;  %v2565_v40 = vor.u32 %v3177_v26, %v2564_v25 }
 0x1ea   :  { %v3067_v25 = vld [vmem:[%s4784_s9 + $0x158] sm:$0xf]  ;;  %v3302_v26 = vld [vmem:[%s4784_s9 + $0x170] sm:$0xf0] }
 0x1eb   :  { %1302 = vmatpush.bf16.msra.mxu3 %v2661_v7  ;;  %1328 = vmatpush.bf16.msra.mxu1 %v2669_v8  ;;  %v2732_v7 = vld [vmem:[%s4782_s7 + $0x160] sm:$0xf]  ;;  %v3219_v8 = vld [vmem:[%s4782_s7 + $0x178] sm:$0xf0] }
 0x1ec   :  { %1341 = vmatpush.bf16.msrb.mxu2 %v2673_v11  ;;  %1367 = vmatpush.bf16.msra.mxu0 %v2681_v12  ;;  %v2740_v11 = vld [vmem:[%s4782_s7 + $0x168] sm:$0xf]  ;;  %v3220_v12 = vld [vmem:[%s4782_s7 + $0x180] sm:$0xf0]  ;;  %v2733_v17 = vor.u32 %v3219_v8, %v2732_v7  ;;  %v3031_v7 = vld [vmem:[%s4784_s9 + $0x118] sm:$0xf] }
 0x1ed   :  { %2542 = vmatmul.msk.bf16.vlgmr.msrb.gmra.mxu3 %vm916_vm2, %v3920_v33  ;;  %2544 = vmatmul.msk.bf16.vlgmr.msrb.gmra.mxu1 %vm916_vm2, %v3920_v33  ;;  %v2741_v18 = vor.u32 %v3220_v12, %v2740_v11  ;;  %v3294_v8 = vld [vmem:[%s4784_s9 + $0x130] sm:$0xf0]  ;;  %v2592_v11 = vld [vmem:[%s4782_s7 + $0x48] sm:$0xf]  ;;  %v3184_v12 = vld [vmem:[%s4782_s7 + $0x60] sm:$0xf0] }
 0x1ee   :  { %2545 = vmatmul.msk.bf16.vlgmr.msra.gmra.mxu2 %vm916_vm2, %v3920_v33  ;;  %1320 = vmatmul.bf16.vlgmr.msrb.gmra.mxu0 %v3665_v30  ;;  %v3032_v16 = vor.u32 %v3294_v8, %v3031_v7  ;;  %v2780_v8 = vld [vmem:[%s4785_s10 + $0x8] sm:$0xf] }
 0x1ef   :  { %1303 = vmatpush.bf16.msra.mxu3 %v2633_v19  ;;  %1329 = vmatpush.bf16.msra.mxu1 %v2641_v20  ;;  %v2704_v19 = vld [vmem:[%s4782_s7 + $0x128] sm:$0xf]  ;;  %v3212_v20 = vld [vmem:[%s4782_s7 + $0x140] sm:$0xf0] }
 0x1f0   :  { %1342 = vmatpush.bf16.msrb.mxu2 %v2645_v23  ;;  %1368 = vmatpush.bf16.msra.mxu0 %v2653_v24  ;;  %v2712_v23 = vld [vmem:[%s4782_s7 + $0x130] sm:$0xf]  ;;  %v3213_v24 = vld [vmem:[%s4782_s7 + $0x148] sm:$0xf0]  ;;  %v2705_v29 = vor.u32 %v3212_v20, %v2704_v19  ;;  %v3003_v19 = vld [vmem:[%s4784_s9 + $0xe0] sm:$0xf] }
 0x1f1   :  { %v2713_v31 = vor.u32 %v3213_v24, %v2712_v23  ;;  %v3287_v20 = vld [vmem:[%s4784_s9 + $0xf8] sm:$0xf0]  ;;  %v2601_v23 = vor.u32 %v3185_v14, %v2600_v13  ;;  %v2874_v24 = vld [vmem:[%s4785_s10 + $0xd4] sm:$0xf0]  ;;  %v2891_v13 = vld [vmem:[%s4784_s9] sm:$0xf] }
 0x1f2   :  { %v3259_v14 = vld [vmem:[%s4784_s9 + $0x18] sm:$0xf0] }
 0x1f3   :  { %1304 = vmatpush.bf16.msra.mxu3 %v2605_v32  ;;  %1330 = vmatpush.bf16.msra.mxu1 %v2613_v34  ;;  %v2676_v32 = vld [vmem:[%s4782_s7 + $0xf0] sm:$0xf]  ;;  %v3205_v34 = vld [vmem:[%s4782_s7 + $0x108] sm:$0xf0] }
 0x1f4   :  { %1343 = vmatpush.bf16.msrb.mxu2 %v2617_v37  ;;  %1369 = vmatpush.bf16.msra.mxu0 %v2625_v38  ;;  %v2813_v37 = vor.u32 %v3320_v27, %v2810_v28  ;;  %v3206_v38 = vld [vmem:[%s4782_s7 + $0x110] sm:$0xf0]  ;;  %v2572_v27 = vld [vmem:[%s4782_s7 + $0x18] sm:$0xf] }
 0x1f5   :  { %v2685_v48 = vor.u32 %v3206_v38, %v2684_v35  ;;  %v3178_v28 = vld [vmem:[%s4782_s7 + $0x30] sm:$0xf0]  ;;  %v2872_v35 = vld [vmem:[%s4785_s10 + $0xb8] sm:$0xf]  ;;  %v2975_v38 = vld [vmem:[%s4784_s9 + $0xa8] sm:$0xf] }
 0x1f7   :  { %1305 = vmatpush.bf16.msra.mxu3 %v2577_v46  ;;  %1331 = vmatpush.bf16.msra.mxu1 %v2585_v47  ;;  %v3308_v46 = vld [vmem:[%s4784_s9 + $0x1a0] sm:$0xf0]  ;;  %v2677_v47 = vor.u32 %v3205_v34, %v2676_v32  ;;  %v3004_v32 = vor.u32 %v3287_v20, %v3003_v19  ;;  %v3337_v34 = vld [vmem:[%s4785_s10 + $0xc8] sm:$0xf0]  ;;  %v3089_v20 = vld [vmem:[%s4784_s9 + $0x1a4] sm:$0xf0] }
 0x1f8   :  { %1344 = vmatpush.bf16.msrb.mxu2 %v2589_v51  ;;  %1370 = vmatpush.bf16.msra.mxu0 %v2597_v52  ;;  %v2785_v51 = vor.u32 %v3313_v41, %v2782_v42  ;;  %v3198_v52 = vld [vmem:[%s4782_s7 + $0xd0] sm:$0xf0]  ;;  %v3088_v56 = vor.u32 %v3308_v46, %v3087_v45  ;;  %v2573_v41 = vor.u32 %v3178_v28, %v2572_v27  ;;  %v3328_v42 = vld [vmem:[%s4785_s10 + $0x84] sm:$0xf]  ;;  %v2836_v46 = vld [vmem:[%s4785_s10 + $0x78] sm:$0xf] }
 0x1f9   :  { %v2649_v61 = vor.u32 %v3198_v52, %v2648_v49  ;;  %v2844_v49 = vld [vmem:[%s4785_s10 + $0x80] sm:$0xf]  ;;  %v2947_v52 = vld [vmem:[%s4784_s9 + $0x70] sm:$0xf]  ;;  %v2892_v27 = vor.u32 %v3259_v14, %v2891_v13  ;;  %v3299_v13 = vld [vmem:[%s4784_s9 + $0x15c] sm:$0xf] }
 0x1fa   :  { %v3069_v14 = vld [vmem:[%s4784_s9 + $0x174] sm:$0xf0] }
 0x1fb   :  { %1306 = vmatpush.bf16.msra.mxu3 %v2549_v62  ;;  %1332 = vmatpush.bf16.msra.mxu1 %v2557_v63  ;;  %v2657_v62 = vor.u32 %v3199_v54, %v2656_v53  ;;  %v2620_v63 = vld [vmem:[%s4782_s7 + $0x80] sm:$0xf]  ;;  %v3273_v53 = vld [vmem:[%s4784_s9 + $0x88] sm:$0xf0] }
 0x1fc   :  { %1345 = vmatpush.bf16.msrb.mxu2 %v2561_v3  ;;  %1371 = vmatpush.bf16.msra.mxu0 %v2569_v4  ;;  %v2833_v3 = vor.u32 %v3326_v57, %v2830_v58  ;;  %v3060_v4 = vor.u32 %v3301_v60, %v3059_v59  ;;  %v3321_v54 = vld [vmem:[%s4785_s10 + $0x4c] sm:$0xf]  ;;  %v2808_v58 = vld [vmem:[%s4785_s10 + $0x40] sm:$0xf]  ;;  %v2948_v59 = vor.u32 %v3273_v53, %v2947_v52  ;;  %v3323_v60 = vld [vmem:[%s4785_s10 + $0x58] sm:$0xf0] }
 0x1fd   :  { %v3011_v53 = vld [vmem:[%s4784_s9 + $0xe8] sm:$0xf] }
 0x1fe   :  { %1307 = vmatmul.bf16.vlgmr.msra.gmra.mxu3 %v3665_v30  ;;  %1333 = vmatmul.bf16.vlgmr.msra.gmra.mxu1 %v3665_v30 }
 0x1ff   :  { %1351 = vmatpush.bf16.msrb.mxu3 %v2761_v5  ;;  %1377 = vmatpush.bf16.msrb.mxu1 %v2769_v6  ;;  %v3319_v5 = vld [vmem:[%s4785_s10 + $0x3c] sm:$0xf]  ;;  %v2802_v6 = vld [vmem:[%s4785_s10 + $0x54] sm:$0xf0] }
 0x200   :  { %1670 = vmatpush.bf16.msra.mxu2 %v2857_v9  ;;  %1709 = vmatpush.bf16.msrb.mxu0 %v2869_v10  ;;  %v2621_v9 = vor.u32 %v3191_v0, %v2620_v63  ;;  %v2629_v10 = vor.u32 %v3192_v2, %v2628_v1  ;;  %v2805_v15 = vor.u32 %v3319_v5, %v2802_v6  ;;  %v2919_v0 = vld [vmem:[%s4784_s9 + $0x38] sm:$0xf]  ;;  %v3266_v1 = vld [vmem:[%s4784_s9 + $0x50] sm:$0xf0]  ;;  %v3309_v5 = vld [vmem:[%s4784_s9 + $0x1a8] sm:$0xf0] }
 0x201   :  { %1346 = vmatmul.bf16.vlgmr.msrb.gmra.mxu2 %v3665_v30  ;;  %1372 = vmatmul.bf16.vlgmr.msra.gmra.mxu0 %v3665_v30  ;;  %v3314_v2 = vld [vmem:[%s4785_s10 + $0x14] sm:$0xf]  ;;  %v2809_v6 = vor.u32 %v3323_v60, %v2808_v58  ;;  %v3005_v60 = vld [vmem:[%s4784_s9 + $0xfc] sm:$0xf0] }
 0x202   :  { %v3318_v58 = vld [vmem:[%s4785_s10 + $0x30] sm:$0xf0] }
 0x203   :  { %1352 = vmatpush.bf16.msrb.mxu3 %v2733_v17  ;;  %1378 = vmatpush.bf16.msrb.mxu1 %v2741_v18  ;;  %v3312_v17 = vld [vmem:[%s4785_s10 + $0x4] sm:$0xf]  ;;  %v2774_v18 = vld [vmem:[%s4785_s10 + $0x1c] sm:$0xf0] }
 0x204   :  { %1671 = vmatpush.bf16.msra.mxu2 %v2829_v21  ;;  %1710 = vmatpush.bf16.msrb.mxu0 %v2841_v22  ;;  %v3335_v21 = vld [vmem:[%s4785_s10 + $0xbc] sm:$0xf]  ;;  %v2593_v22 = vor.u32 %v3184_v12, %v2592_v11  ;;  %v2920_v11 = vor.u32 %v3266_v1, %v2919_v0  ;;  %v3317_v12 = vld [vmem:[%s4785_s10 + $0x28] sm:$0xf0]  ;;  %v3306_v0 = vld [vmem:[%s4784_s9 + $0x194] sm:$0xf] }
 0x205   :  { %v3097_v1 = vld [vmem:[%s4784_s9 + $0x1ac] sm:$0xf0] }
 0x207   :  { %1353 = vmatpush.bf16.msrb.mxu3 %v2705_v29  ;;  %1379 = vmatpush.bf16.msrb.mxu1 %v2713_v31  ;;  %v2864_v29 = vld [vmem:[%s4785_s10 + $0xb0] sm:$0xf]  ;;  %v2777_v31 = vor.u32 %v3312_v17, %v2774_v18  ;;  %v3339_v17 = vld [vmem:[%s4785_s10 + $0xd8] sm:$0xf0]  ;;  %v3305_v18 = vld [vmem:[%s4784_s9 + $0x18c] sm:$0xf] }
 0x208   :  { %1672 = vmatpush.bf16.msra.mxu2 %v2801_v36  ;;  %1711 = vmatpush.bf16.msrb.mxu0 %v2813_v37  ;;  %v3338_v36 = vld [vmem:[%s4785_s10 + $0xd0] sm:$0xf0]  ;;  %v2877_v37 = vor.u32 %v3335_v21, %v2874_v24  ;;  %v2865_v44 = vor.u32 %v3337_v34, %v2864_v29  ;;  %v3103_v21 = vld [vmem:[%s4784_s9 + $0x198] sm:$0xf]  ;;  %v3092_v29 = vor.u32 %v3305_v18, %v3089_v20  ;;  %v3332_v34 = vld [vmem:[%s4785_s10 + $0xa0] sm:$0xf0] }
 0x209   :  { %v2873_v45 = vor.u32 %v3338_v36, %v2872_v35  ;;  %v3298_v35 = vld [vmem:[%s4784_s9 + $0x154] sm:$0xf]  ;;  %v3068_v36 = vor.u32 %v3302_v26, %v3067_v25  ;;  %v3072_v20 = vor.u32 %v3299_v13, %v3069_v14  ;;  %v2927_v25 = vld [vmem:[%s4784_s9 + $0x40] sm:$0xf]  ;;  %v3267_v26 = vld [vmem:[%s4784_s9 + $0x58] sm:$0xf0] }
 0x20a   :  { %v3027_v13 = vld [vmem:[%s4784_s9 + $0xf8] sm:$0xf]  ;;  %v3290_v14 = vld [vmem:[%s4784_s9 + $0x110] sm:$0xf0] }
 0x20b   :  { %1354 = vmatpush.bf16.msrb.mxu3 %v2677_v47  ;;  %1380 = vmatpush.bf16.msrb.mxu1 %v2685_v48  ;;  %v2976_v47 = vor.u32 %v3280_v39, %v2975_v38  ;;  %v3330_v48 = vld [vmem:[%s4785_s10 + $0x90] sm:$0xf0]  ;;  %v3075_v38 = vld [vmem:[%s4784_s9 + $0x160] sm:$0xf]  ;;  %v3303_v39 = vld [vmem:[%s4784_s9 + $0x178] sm:$0xf0] }
 0x20c   :  { %1673 = vmatpush.bf16.msra.mxu2 %v2773_v50  ;;  %1712 = vmatpush.bf16.msrb.mxu0 %v2785_v51  ;;  %v3331_v50 = vld [vmem:[%s4785_s10 + $0x98] sm:$0xf0]  ;;  %v2849_v51 = vor.u32 %v3328_v42, %v2846_v43 }
 0x20d   :  { %v2845_v57 = vor.u32 %v3331_v50, %v2844_v49  ;;  %v3295_v42 = vld [vmem:[%s4784_s9 + $0x138] sm:$0xf0]  ;;  %v3047_v49 = vld [vmem:[%s4784_s9 + $0x128] sm:$0xf]  ;;  %v3296_v50 = vld [vmem:[%s4784_s9 + $0x140] sm:$0xf0] }
 0x20f   :  { %1355 = vmatpush.bf16.msrb.mxu3 %v2649_v61  ;;  %1381 = vmatpush.bf16.msrb.mxu1 %v2657_v62  ;;  %v2816_v61 = vld [vmem:[%s4785_s10 + $0x48] sm:$0xf]  ;;  %v3324_v62 = vld [vmem:[%s4785_s10 + $0x60] sm:$0xf0] }
 0x210   :  { %1683 = vmatpush.bf16.msrb.mxu2 %v2861_v55  ;;  %2045 = vmatpush.bf16.msra.mxu0 %v3088_v56  ;;  %v2818_v55 = vld [vmem:[%s4785_s10 + $0x64] sm:$0xf0]  ;;  %v2837_v56 = vor.u32 %v3330_v48, %v2836_v46  ;;  %v2817_v7 = vor.u32 %v3324_v62, %v2816_v61  ;;  %v3325_v46 = vld [vmem:[%s4785_s10 + $0x68] sm:$0xf0]  ;;  %v3033_v48 = vld [vmem:[%s4784_s9 + $0x134] sm:$0xf0] }
 0x211   :  { %2882 = vmatmul.msk.bf16.vlgmr.msra.gmra.mxu2 %vm916_vm2, %v3920_v33  ;;  %2885 = vmatmul.msk.bf16.vlgmr.msrb.gmra.mxu0 %vm916_vm2, %v3920_v33  ;;  %v2821_v63 = vor.u32 %v3321_v54, %v2818_v55  ;;  %v3288_v54 = vld [vmem:[%s4784_s9 + $0x100] sm:$0xf0]  ;;  %v3019_v61 = vld [vmem:[%s4784_s9 + $0xf0] sm:$0xf]  ;;  %v3289_v62 = vld [vmem:[%s4784_s9 + $0x108] sm:$0xf0] }
 0x213   :  { %1356 = vmatpush.bf16.msrb.mxu3 %v2621_v9  ;;  %1382 = vmatpush.bf16.msrb.mxu1 %v2629_v10  ;;  %v3316_v9 = vld [vmem:[%s4785_s10 + $0x20] sm:$0xf0]  ;;  %v2788_v10 = vld [vmem:[%s4785_s10 + $0x10] sm:$0xf] }
 0x214   :  { %1684 = vmatpush.bf16.msrb.mxu2 %v2833_v3  ;;  %2046 = vmatpush.bf16.msra.mxu0 %v3060_v4  ;;  %v2790_v3 = vld [vmem:[%s4785_s10 + $0x2c] sm:$0xf0]  ;;  %v2789_v24 = vor.u32 %v3317_v12, %v2788_v10  ;;  %v2991_v10 = vld [vmem:[%s4784_s9 + $0xb8] sm:$0xf] }
 0x215   :  { %v3095_v4 = vld [vmem:[%s4784_s9 + $0x190] sm:$0xf] }
 0x216   :  { %v3096_v19 = vor.u32 %v3309_v5, %v3095_v4  ;;  %v3281_v4 = vld [vmem:[%s4784_s9 + $0xc8] sm:$0xf0] }
 0x217   :  { %1357 = vmatpush.bf16.msrb.mxu3 %v2593_v22  ;;  %1383 = vmatpush.bf16.msrb.mxu1 %v2601_v23  ;;  %v3310_v22 = vld [vmem:[%s4784_s9 + $0x1b0] sm:$0xf0]  ;;  %v2781_v23 = vor.u32 %v3316_v9, %v2780_v8  ;;  %v3100_v8 = vor.u32 %v3306_v0, %v3097_v1  ;;  %v2977_v9 = vld [vmem:[%s4784_s9 + $0xc4] sm:$0xf0]  ;;  %v3077_v0 = vld [vmem:[%s4784_s9 + $0x17c] sm:$0xf0] }
 0x218   :  { %1685 = vmatpush.bf16.msrb.mxu2 %v2805_v15  ;;  %2047 = vmatpush.bf16.msra.mxu0 %v3032_v16  ;;  %v2793_v15 = vor.u32 %v3314_v2, %v2790_v3  ;;  %v2880_v16 = vld [vmem:[%s4785_s10 + $0xc0] sm:$0xf]  ;;  %v2983_v3 = vld [vmem:[%s4784_s9 + $0xb0] sm:$0xf] }
 0x219   :  { %v2881_v28 = vor.u32 %v3339_v17, %v2880_v16  ;;  %v2984_v12 = vor.u32 %v3281_v4, %v2983_v3  ;;  %v3274_v16 = vld [vmem:[%s4784_s9 + $0x90] sm:$0xf0]  ;;  %v2957_v3 = vld [vmem:[%s4784_s9 + $0x94] sm:$0xf0]  ;;  %v3055_v4 = vld [vmem:[%s4784_s9 + $0x130] sm:$0xf] }
 0x21b   :  { %1358 = vmatpush.bf16.msrb.mxu3 %v2565_v40  ;;  %1384 = vmatpush.bf16.msrb.mxu1 %v2573_v41  ;;  %v3039_v41 = vld [vmem:[%s4784_s9 + $0x120] sm:$0xf] }
 0x21c   :  { %1686 = vmatpush.bf16.msrb.mxu2 %v2777_v31  ;;  %2048 = vmatpush.bf16.msra.mxu0 %v3004_v32  ;;  %v3104_v31 = vor.u32 %v3310_v22, %v3103_v21  ;;  %v2852_v32 = vld [vmem:[%s4785_s10 + $0x88] sm:$0xf]  ;;  %v2949_v21 = vld [vmem:[%s4784_s9 + $0x8c] sm:$0xf0]  ;;  %v2963_v22 = vld [vmem:[%s4784_s9 + $0x80] sm:$0xf] }
 0x21d   :  { %v2853_v40 = vor.u32 %v3332_v34, %v2852_v32  ;;  %v3263_v32 = vld [vmem:[%s4784_s9 + $0x3c] sm:$0xf]  ;;  %v2921_v34 = vld [vmem:[%s4784_s9 + $0x54] sm:$0xf0] }
 0x21e   :  { %1359 = vmatmul.bf16.vlgmr.msrb.gmra.mxu3 %v3665_v30  ;;  %1385 = vmatmul.bf16.vlgmr.msrb.gmra.mxu1 %v3665_v30 }
 0x21f   :  { %1696 = vmatpush.bf16.msra.mxu3 %v2865_v44  ;;  %1722 = vmatpush.bf16.msra.mxu1 %v2873_v45  ;;  %v3076_v44 = vor.u32 %v3303_v39, %v3075_v38  ;;  %v2824_v45 = vld [vmem:[%s4785_s10 + $0x50] sm:$0xf]  ;;  %v2899_v39 = vld [vmem:[%s4784_s9 + $0x8] sm:$0xf] }
 0x220   :  { %1735 = vmatpush.bf16.msra.mxu2 %v2877_v37  ;;  %2049 = vmatpush.bf16.msra.mxu0 %v2976_v47  ;;  %v3061_v37 = vld [vmem:[%s4784_s9 + $0x16c] sm:$0xf0]  ;;  %v3291_v47 = vld [vmem:[%s4784_s9 + $0x11c] sm:$0xf]  ;;  %v2825_v52 = vor.u32 %v3325_v46, %v2824_v45  ;;  %v3111_v45 = vld [vmem:[%s4784_s9 + $0x1a0] sm:$0xf] }
 0x221   :  { %2883 = vmatmul.msk.bf16.vlgmr.msrb.gmra.mxu2 %vm916_vm2, %v3920_v33  ;;  %v3064_v43 = vor.u32 %v3298_v35, %v3061_v37  ;;  %v3036_v55 = vor.u32 %v3291_v47, %v3033_v48  ;;  %v2935_v35 = vld [vmem:[%s4784_s9 + $0x48] sm:$0xf]  ;;  %v2928_v37 = vor.u32 %v3267_v26, %v2927_v25  ;;  %v3311_v46 = vld [vmem:[%s4784_s9 + $0x1b8] sm:$0xf0]  ;;  %v3256_v47 = vld [vmem:[%s4784_s9 + $0x4] sm:$0xf] }
 0x222   :  { %v2893_v48 = vld [vmem:[%s4784_s9 + $0x1c] sm:$0xf0]  ;;  %v3279_v26 = vld [vmem:[%s4784_s9 + $0xbc] sm:$0xf] }
 0x223   :  { %1697 = vmatpush.bf16.msra.mxu3 %v2837_v56  ;;  %1723 = vmatpush.bf16.msra.mxu1 %v2845_v57  ;;  %v3048_v56 = vor.u32 %v3296_v50, %v3047_v49  ;;  %v2796_v57 = vld [vmem:[%s4785_s10 + $0x18] sm:$0xf]  ;;  %v2907_v49 = vld [vmem:[%s4784_s9 + $0x10] sm:$0xf]  ;;  %v3261_v50 = vld [vmem:[%s4784_s9 + $0x28] sm:$0xf0] }
 0x224   :  { %1736 = vmatpush.bf16.msra.mxu2 %v2849_v51  ;;  %2050 = vmatpush.bf16.msra.mxu0 %v2948_v59  ;;  %v3040_v51 = vor.u32 %v3295_v42, %v3039_v41  ;;  %v3284_v59 = vld [vmem:[%s4784_s9 + $0xe4] sm:$0xf]  ;;  %v2797_v2 = vor.u32 %v3318_v58, %v2796_v57  ;;  %v3285_v41 = vld [vmem:[%s4784_s9 + $0xec] sm:$0xf]  ;;  %v3013_v42 = vld [vmem:[%s4784_s9 + $0x104] sm:$0xf0]  ;;  %v2896_v57 = vor.u32 %v3256_v47, %v2893_v48 }
 0x225   :  { %v3008_v5 = vor.u32 %v3284_v59, %v3005_v60  ;;  %v2908_v58 = vor.u32 %v3261_v50, %v2907_v49  ;;  %v3083_v59 = vld [vmem:[%s4784_s9 + $0x168] sm:$0xf]  ;;  %v3304_v60 = vld [vmem:[%s4784_s9 + $0x180] sm:$0xf0]  ;;  %v3258_v47 = vld [vmem:[%s4784_s9 + $0x14] sm:$0xf] }
 0x226   :  { %v3084_v1 = vor.u32 %v3304_v60, %v3083_v59  ;;  %v2909_v48 = vld [vmem:[%s4784_s9 + $0x2c] sm:$0xf0] }
 0x227   :  { %1698 = vmatpush.bf16.msra.mxu3 %v2809_v6  ;;  %1724 = vmatpush.bf16.msra.mxu1 %v2817_v7  ;;  %v3020_v6 = vor.u32 %v3289_v62, %v3019_v61  ;;  %v3277_v7 = vld [vmem:[%s4784_s9 + $0xac] sm:$0xf] }
 0x228   :  { %1737 = vmatpush.bf16.msra.mxu2 %v2821_v63  ;;  %2051 = vmatpush.bf16.msra.mxu0 %v2920_v11  ;;  %v3012_v63 = vor.u32 %v3288_v54, %v3011_v53  ;;  %v3282_v11 = vld [vmem:[%s4784_s9 + $0xd0] sm:$0xf0]  ;;  %v2980_v17 = vor.u32 %v3277_v7, %v2977_v9  ;;  %v3105_v53 = vld [vmem:[%s4784_s9 + $0x1b4] sm:$0xf0]  ;;  %v3112_v54 = vor.u32 %v3311_v46, %v3111_v45  ;;  %v3049_v9 = vld [vmem:[%s4784_s9 + $0x144] sm:$0xf0] }
 0x229   :  { %v2992_v18 = vor.u32 %v3282_v11, %v2991_v10  ;;  %v3264_v11 = vld [vmem:[%s4784_s9 + $0x44] sm:$0xf] }
 0x22b   :  { %1699 = vmatpush.bf16.msra.mxu3 %v2781_v23  ;;  %1725 = vmatpush.bf16.msra.mxu1 %v2789_v24  ;;  %v3275_v23 = vld [vmem:[%s4784_s9 + $0x98] sm:$0xf0] }
 0x22c   :  { %1738 = vmatpush.bf16.msra.mxu2 %v2793_v15  ;;  %2052 = vmatpush.bf16.msra.mxu0 %v2892_v27  ;;  %v2955_v15 = vld [vmem:[%s4784_s9 + $0x78] sm:$0xf]  ;;  %v3292_v27 = vld [vmem:[%s4784_s9 + $0x124] sm:$0xf] }
 0x22d   :  { %v2956_v24 = vor.u32 %v3274_v16, %v2955_v15 }
 0x22e   :  { %2884 = vmatmul.msk.bf16.vlgmr.msra.gmra.mxu3 %vm916_vm2, %v3920_v33  ;;  %2886 = vmatmul.msk.bf16.vlgmr.msra.gmra.mxu1 %vm916_vm2, %v3920_v33 }
 0x22f   :  { %1748 = vmatpush.bf16.msrb.mxu3 %v2881_v28  ;;  %2058 = vmatpush.bf16.msrb.mxu1 %v3092_v29  ;;  %v3041_v28 = vld [vmem:[%s4784_s9 + $0x13c] sm:$0xf0] }
 0x230   :  { %2071 = vmatpush.bf16.msrb.mxu2 %v3096_v19  ;;  %2097 = vmatpush.bf16.msrb.mxu0 %v3104_v31  ;;  %v3270_v19 = vld [vmem:[%s4784_s9 + $0x74] sm:$0xf]  ;;  %v2964_v31 = vor.u32 %v3275_v23, %v2963_v22  ;;  %v3044_v38 = vor.u32 %v3292_v27, %v3041_v28  ;;  %v2999_v22 = vld [vmem:[%s4784_s9 + $0xc0] sm:$0xf]  ;;  %v3283_v23 = vld [vmem:[%s4784_s9 + $0xd8] sm:$0xf0] }
 0x231   :  { %2053 = vmatmul.bf16.vlgmr.msra.gmra.mxu0 %v3665_v30  ;;  %2887 = vmatmul.msk.bf16.vlgmr.msra.gmra.mxu2 %vm916_vm2, %v3920_v33  ;;  %v2952_v29 = vor.u32 %v3270_v19, %v2949_v21  ;;  %v3028_v19 = vor.u32 %v3290_v14, %v3027_v13  ;;  %v2901_v21 = vld [vmem:[%s4784_s9 + $0x24] sm:$0xf0]  ;;  %v2993_v27 = vld [vmem:[%s4784_s9 + $0xd4] sm:$0xf0]  ;;  %v3000_v28 = vor.u32 %v3283_v23, %v2999_v22 }
 0x233   :  { %1749 = vmatpush.bf16.msrb.mxu3 %v2853_v40  ;;  %2059 = vmatpush.bf16.msrb.mxu1 %v3064_v43  ;;  %v3260_v40 = vld [vmem:[%s4784_s9 + $0x20] sm:$0xf0]  ;;  %v2924_v43 = vor.u32 %v3263_v32, %v2921_v34  ;;  %v2996_v32 = vor.u32 %v3279_v26, %v2993_v27 }
 0x234   :  { %2072 = vmatpush.bf16.msrb.mxu2 %v3068_v36  ;;  %2098 = vmatpush.bf16.msrb.mxu0 %v3076_v44  ;;  %v3268_v36 = vld [vmem:[%s4784_s9 + $0x60] sm:$0xf0] }
 0x235   :  { %v2936_v44 = vor.u32 %v3268_v36, %v2935_v35  ;;  %v3272_v34 = vld [vmem:[%s4784_s9 + $0x84] sm:$0xf]  ;;  %v2965_v35 = vld [vmem:[%s4784_s9 + $0x9c] sm:$0xf0] }
 0x237   :  { %1750 = vmatpush.bf16.msrb.mxu3 %v2825_v52  ;;  %2060 = vmatpush.bf16.msrb.mxu1 %v3036_v55  ;;  %v3016_v52 = vor.u32 %v3285_v41, %v3013_v42  ;;  %v3278_v55 = vld [vmem:[%s4784_s9 + $0xb4] sm:$0xf]  ;;  %v2937_v41 = vld [vmem:[%s4784_s9 + $0x64] sm:$0xf0] }
 0x238   :  { %2073 = vmatpush.bf16.msrb.mxu2 %v3040_v51  ;;  %2099 = vmatpush.bf16.msrb.mxu0 %v3048_v56  ;;  %v2900_v51 = vor.u32 %v3260_v40, %v2899_v39  ;;  %v2985_v56 = vld [vmem:[%s4784_s9 + $0xcc] sm:$0xf0]  ;;  %v2968_v39 = vor.u32 %v3272_v34, %v2965_v35  ;;  %v3265_v40 = vld [vmem:[%s4784_s9 + $0x4c] sm:$0xf] }
 0x239   :  { %v2988_v62 = vor.u32 %v3278_v55, %v2985_v56  ;;  %v2940_v45 = vor.u32 %v3265_v40, %v2937_v41  ;;  %v4737_v55 = vld [vmem:[%s4786_s11] sm:$0x7f] }
 0x23a   :  { %v1392_v59 = vperm.slane %v4737_v55, 1  ;;  %v1391_v14 = vperm.slane %v4737_v55, 0  ;;  %v1397_v34 = vperm.slane %v4737_v55, 6 }
 0x23b   :  { %1751 = vmatpush.bf16.msrb.mxu3 %v2797_v2  ;;  %2061 = vmatpush.bf16.msrb.mxu1 %v3008_v5  ;;  %v3271_v2 = vld [vmem:[%s4784_s9 + $0x7c] sm:$0xf]  ;;  %v3297_v5 = vld [vmem:[%s4784_s9 + $0x148] sm:$0xf0] }
 0x23c   :  { %2074 = vmatpush.bf16.msrb.mxu2 %v3012_v63  ;;  %2100 = vmatpush.bf16.msrb.mxu0 %v3020_v6  ;;  %v3300_v63 = vld [vmem:[%s4784_s9 + $0x164] sm:$0xf]  ;;  %v2960_v7 = vor.u32 %v3271_v2, %v2957_v3  ;;  %v3056_v10 = vor.u32 %v3297_v5, %v3055_v4  ;;  %v1393_v5 = vperm.slane %v4737_v55, 2 }
 0x23d   :  { %v3080_v6 = vor.u32 %v3300_v63, %v3077_v0 }
 0x23e   :  { %2888 = vmatmul.msk.bf16.vlgmr.msrb.gmra.mxu3 %vm916_vm2, %v3920_v33  ;;  %v3307_v33 = vld [vmem:[%s4784_s9 + $0x19c] sm:$0xf] }
 0x23f   :  { %2084 = vmatpush.bf16.msra.mxu3 %v3100_v8  ;;  %2062 = vmatpush.bf16.msrb.mxu1 %v2980_v17  ;;  %v3108_v61 = vor.u32 %v3307_v33, %v3105_v53  ;;  %v3293_v8 = vld [vmem:[%s4784_s9 + $0x12c] sm:$0xf]  ;;  %v3286_v17 = vld [vmem:[%s4784_s9 + $0xf4] sm:$0xf] }
 0x240   :  { %2075 = vmatpush.bf16.msrb.mxu2 %v2984_v12  ;;  %2101 = vmatpush.bf16.msrb.mxu0 %v2992_v18  ;;  %v2929_v12 = vld [vmem:[%s4784_s9 + $0x5c] sm:$0xf0]  ;;  %v3052_v15 = vor.u32 %v3293_v8, %v3049_v9  ;;  %v3021_v18 = vld [vmem:[%s4784_s9 + $0x10c] sm:$0xf0] }
 0x241   :  { %v2932_v16 = vor.u32 %v3264_v11, %v2929_v12 }
 0x243   :  { %2085 = vmatpush.bf16.msra.mxu3 %v3072_v20  ;;  %2063 = vmatpush.bf16.msrb.mxu1 %v2952_v29  ;;  %v3257_v20 = vld [vmem:[%s4784_s9 + $0xc] sm:$0xf]  ;;  %v2971_v29 = vld [vmem:[%s4784_s9 + $0x88] sm:$0xf] }
 0x244   :  { %2076 = vmatpush.bf16.msrb.mxu2 %v2956_v24  ;;  %2102 = vmatpush.bf16.msrb.mxu0 %v2964_v31  ;;  %v3024_v24 = vor.u32 %v3286_v17, %v3021_v18  ;;  %v2904_v25 = vor.u32 %v3257_v20, %v2901_v21  ;;  %v3276_v31 = vld [vmem:[%s4784_s9 + $0xa0] sm:$0xf0]  ;;  %v1394_v17 = vperm.slane %v4737_v55, 3 }
 0x245   :  { %v2972_v36 = vor.u32 %v3276_v31, %v2971_v29 }
 0x247   :  { %2086 = vmatpush.bf16.msra.mxu3 %v3044_v38  ;;  %2064 = vmatpush.bf16.msrb.mxu1 %v2924_v43  ;;  %v3269_v38 = vld [vmem:[%s4784_s9 + $0x68] sm:$0xf0]  ;;  %v2915_v43 = vld [vmem:[%s4784_s9 + $0x18] sm:$0xf] }
 0x248   :  { %2077 = vmatpush.bf16.msrb.mxu2 %v2928_v37  ;;  %2103 = vmatpush.bf16.msrb.mxu0 %v2936_v44  ;;  %v2943_v37 = vld [vmem:[%s4784_s9 + $0x50] sm:$0xf]  ;;  %v3262_v44 = vld [vmem:[%s4784_s9 + $0x30] sm:$0xf0]  ;;  %s3397_s9 = smov [#allocation2]  }
 0x249   :  { %v2944_v42 = vor.u32 %v3269_v38, %v2943_v37  ;;  %v2916_v50 = vor.u32 %v3262_v44, %v2915_v43  ;;  %s2162_s11 = sshll.u32 %s3397_s9, 4  ;;  %s2163_s11 = int_to_ptr.vmem [resolvable:$true] %s2162_s11 }
 0x24b   :  { %2087 = vmatpush.bf16.msra.mxu3 %v3016_v52  ;;  %2065 = vmatpush.bf16.msrb.mxu1 %v2896_v57 }
 0x24c   :  { %2078 = vmatpush.bf16.msrb.mxu2 %v2900_v51  ;;  %2104 = vmatpush.bf16.msrb.mxu0 %v2908_v58  ;;  %v2912_v51 = vor.u32 %v3258_v47, %v2909_v48 }
 0x24e   :  { %2066 = vmatmul.bf16.vlgmr.msrb.gmra.mxu1 %v3665_v30 }
 0x24f   :  { %2079 = vmatmul.bf16.vlgmr.msrb.gmra.mxu2 %v3665_v30  ;;  %2110 = vmatpush.bf16.msra.mxu1 %v3108_v61 }
 0x250   :  { %2123 = vmatpush.bf16.msra.mxu2 %v3112_v54  ;;  %2088 = vmatpush.bf16.msra.mxu3 %v2988_v62 }
 0x251   :  { %2105 = vmatmul.bf16.vlgmr.msrb.gmra.mxu0 %v3665_v30 }
 0x253   :  { %2111 = vmatpush.bf16.msra.mxu1 %v3080_v6 }
 0x254   :  { %2124 = vmatpush.bf16.msra.mxu2 %v3084_v1  ;;  %2089 = vmatpush.bf16.msra.mxu3 %v2960_v7  ;;  %v1396_v7 = vperm.slane %v4737_v55, 5 }
 0x257   :  { %2112 = vmatpush.bf16.msra.mxu1 %v3052_v15 }
 0x258   :  { %2125 = vmatpush.bf16.msra.mxu2 %v3056_v10  ;;  %2090 = vmatpush.bf16.msra.mxu3 %v2932_v16 }
 0x25a   :  { %v942_v46 = vpop.f32.mrf.mxu1 }
 0x25b   :  { %2113 = vmatpush.bf16.msra.mxu1 %v3024_v24  ;;  %v4730_v49 = vpop.f32.mrf.mxu0 }
 0x25c   :  { %2126 = vmatpush.bf16.msra.mxu2 %v3028_v19  ;;  %2091 = vmatpush.bf16.msra.mxu3 %v2904_v25 }
 0x25f   :  { %2092 = vmatmul.bf16.vlgmr.msra.gmra.mxu3 %v3665_v30  ;;  %2114 = vmatpush.bf16.msra.mxu1 %v2996_v32 }
 0x260   :  { %2127 = vmatpush.bf16.msra.mxu2 %v3000_v28  ;;  %v929_v52 = vpop.f32.mrf.mxu3 }
 0x261   :  { %v955_v33 = vpop.f32.mrf.mxu2 }
 0x262   :  { %v944_v53 = vpop.f32.mrf.mxu1 }
 0x263   :  { %2115 = vmatpush.bf16.msra.mxu1 %v2968_v39  ;;  %v983_v54 = vpop.f32.mrf.mxu0  ;;  %v1395_v39 = vperm.slane %v4737_v55, 4 }
 0x264   :  { %2128 = vmatpush.bf16.msra.mxu2 %v2972_v36 }
 0x267   :  { %2116 = vmatpush.bf16.msra.mxu1 %v2940_v45 }
 0x268   :  { %2129 = vmatpush.bf16.msra.mxu2 %v2944_v42  ;;  %v931_v56 = vpop.f32.mrf.mxu3 }
 0x269   :  { %v957_v57 = vpop.f32.mrf.mxu2 }
 0x26a   :  { %v994_v58 = vpop.f32.mrf.mxu1 }
 0x26b   :  { %2117 = vmatpush.bf16.msra.mxu1 %v2912_v51  ;;  %v1321_v60 = vpop.f32.mrf.mxu0 }
 0x26c   :  { %2130 = vmatpush.bf16.msra.mxu2 %v2916_v50  ;;  %v1322_v61 = vadd.f32 %v1321_v60, %v942_v46 }
 0x26e   :  { %2118 = vmatmul.bf16.vlgmr.msra.gmra.mxu1 %v3665_v30  ;;  %v1406_v62 = vadd.f32 %v1392_v59, %v1322_v61 }
 0x26f   :  { %2131 = vmatmul.bf16.vlgmr.msra.gmra.mxu2 %v3665_v30 }
 0x270   :  { %v1413_v63 = vmax.f32 %v1406_v62, 0.0  ;;  %v968_v0 = vpop.f32.mrf.mxu3 }
 0x271   :  { %v1007_v1 = vpop.f32.mrf.mxu2 }
 0x272   :  { %1420 = vst [vmem:[#allocation2 + $0x8] sm:$0xff] %v1413_v63  ;;  %v996_v30 = vpop.f32.mrf.mxu1 }
 0x273   :  { %v1323_v2 = vpop.f32.mrf.mxu0 }
 0x278   :  { %v970_v3 = vpop.f32.mrf.mxu3 }
 0x279   :  { %v1009_v4 = vpop.f32.mrf.mxu2 }
 0x27b   :  { %v1334_v6 = vpop.f32.mrf.mxu1 }
 0x27c   :  { %v1335_v8 = vadd.f32 %v1334_v6, %v955_v33 }
 0x27e   :  { %v1373_v9 = vpop.f32.mrf.mxu0  ;;  %v1407_v11 = vadd.f32 %v1393_v5, %v1335_v8 }
 0x27f   :  { %v1374_v10 = vadd.f32 %v1373_v9, %v994_v58 }
 0x280   :  { %v1414_v13 = vmax.f32 %v1407_v11, 0.0 }
 0x281   :  { %v1410_v12 = vadd.f32 %v1396_v7, %v1374_v10  ;;  %v1308_v16 = vpop.f32.mrf.mxu3 }
 0x282   :  { %1421 = vst [vmem:[#allocation2 + $0x10] sm:$0xff] %v1414_v13  ;;  %v1309_v18 = vadd.f32 %v1308_v16, %v929_v52 }
 0x283   :  { %v1417_v15 = vmax.f32 %v1410_v12, 0.0  ;;  %v1336_v21 = vpop.f32.mrf.mxu1 }
 0x284   :  { %v1347_v19 = vpop.f32.mrf.mxu2  ;;  %v1405_v22 = vadd.f32 %v1391_v14, %v1309_v18 }
 0x285   :  { %1424 = vst [vmem:[#allocation2 + $0x28] sm:$0xff] %v1417_v15  ;;  %v1348_v20 = vadd.f32 %v1347_v19, %v968_v0 }
 0x286   :  { %v1375_v23 = vpop.f32.mrf.mxu0  ;;  %v1412_v25 = vmax.f32 %v1405_v22, 0.0 }
 0x287   :  { %v1408_v24 = vadd.f32 %v1394_v17, %v1348_v20 }
 0x288   :  { %1419 = vst [vmem:[#allocation2] sm:$0xff] %v1412_v25 }
 0x289   :  { %v1415_v26 = vmax.f32 %v1408_v24, 0.0  ;;  %v1310_v27 = vpop.f32.mrf.mxu3 }
 0x28b   :  { %1422 = vst [vmem:[#allocation2 + $0x18] sm:$0xff] %v1415_v26 }
 0x28c   :  { %v1349_v28 = vpop.f32.mrf.mxu2 }
 0x28e   :  { %v1714_v29 = vpop.f32.mrf.mxu0 }
 0x294   :  { %v1675_v31 = vpop.f32.mrf.mxu2 }
 0x296   :  { %v1716_v32 = vpop.f32.mrf.mxu0 }
 0x29b   :  { %v1386_v35 = vpop.f32.mrf.mxu1 }
 0x29c   :  { %v1387_v36 = vadd.f32 %v1386_v35, %v1007_v1  ;;  %v1677_v37 = vpop.f32.mrf.mxu2 }
 0x29e   :  { %v1411_v38 = vadd.f32 %v1397_v34, %v1387_v36 }
 0x2a0   :  { %v1418_v40 = vmax.f32 %v1411_v38, 0.0 }
 0x2a1   :  { %v1360_v41 = vpop.f32.mrf.mxu3 }
 0x2a2   :  { %v1361_v42 = vadd.f32 %v1360_v41, %v4730_v49  ;;  %1425 = vst.msk [vmem:[#allocation2 + $0x30] sm:$0xff] %vm456_vm0, %v1418_v40 }
 0x2a3   :  { %v1388_v44 = vpop.f32.mrf.mxu1 }
 0x2a4   :  { %v1409_v43 = vadd.f32 %v1395_v39, %v1361_v42  ;;  %v1688_v46 = vpop.f32.mrf.mxu2 }
 0x2a6   :  { %v1416_v45 = vmax.f32 %v1409_v43, 0.0 }
 0x2a8   :  { %1423 = vst [vmem:[#allocation2 + $0x20] sm:$0xff] %v1416_v45 }
 0x2a9   :  { %v1362_v48 = vpop.f32.mrf.mxu3  ;;  %2167 = dma.vmem_to_hbm [thread:$0]  %s2163_s11, 896, %s2165_s0, [#allocation3]  }
 0x2ab   :  { %v1727_v51 = vpop.f32.mrf.mxu1 }
 0x2ac   :  { %v1690_v33 = vpop.f32.mrf.mxu2 }
 0x2ae   :  { %v2054_v47 = vpop.f32.mrf.mxu0 }
 0x2af   :  { %v2055_v50 = vadd.f32 %v2054_v47, %v1675_v31 }
 0x2b1   :  { %v2136_v49 = vadd.f32 %v2055_v50, %v1391_v14  ;;  %v1701_v54 = vpop.f32.mrf.mxu3 }
 0x2b3   :  { %v2143_v52 = vmax.f32 %v2136_v49, 0.0  ;;  %v1729_v56 = vpop.f32.mrf.mxu1 }
 0x2b4   :  { %v1740_v57 = vpop.f32.mrf.mxu2 }
 0x2b5   :  { %2150 = vst [vmem:[#allocation4] sm:$0xff] %v2143_v52 }
 0x2b6   :  { %v2056_v53 = vpop.f32.mrf.mxu0 }
 0x2b9   :  { %v1703_v58 = vpop.f32.mrf.mxu3 }
 0x2bc   :  { %v1742_v60 = vpop.f32.mrf.mxu2 }
 0x2c1   :  { %v1753_v61 = vpop.f32.mrf.mxu3 }
 0x2c9   :  { %v1755_v4 = vpop.f32.mrf.mxu3 }
 0x2cb   :  { %v2067_v62 = vpop.f32.mrf.mxu1 }
 0x2cc   :  { %v2068_v63 = vadd.f32 %v2067_v62, %v1688_v46 }
 0x2ce   :  { %v2106_v0 = vpop.f32.mrf.mxu0  ;;  %v2137_v30 = vadd.f32 %v2068_v63, %v1392_v59 }
 0x2cf   :  { %v2107_v1 = vadd.f32 %v2106_v0, %v1727_v51 }
 0x2d0   :  { %v2144_v6 = vmax.f32 %v2137_v30, 0.0 }
 0x2d1   :  { %v2140_v2 = vadd.f32 %v2107_v1, %v1395_v39 }
 0x2d2   :  { %v2080_v3 = vpop.f32.mrf.mxu2  ;;  %2151 = vst [vmem:[#allocation4 + $0x8] sm:$0xff] %v2144_v6 }
 0x2d3   :  { %v2081_v8 = vadd.f32 %v2080_v3, %v1701_v54  ;;  %v2147_v9 = vmax.f32 %v2140_v2, 0.0  ;;  %v2069_v11 = vpop.f32.mrf.mxu1 }
 0x2d5   :  { %v2138_v10 = vadd.f32 %v2081_v8, %v1393_v5  ;;  %2154 = vst [vmem:[#allocation4 + $0x20] sm:$0xff] %v2147_v9 }
 0x2d6   :  { %v2108_v13 = vpop.f32.mrf.mxu0 }
 0x2d7   :  { %v2145_v12 = vmax.f32 %v2138_v10, 0.0 }
 0x2d9   :  { %2152 = vst [vmem:[#allocation4 + $0x10] sm:$0xff] %v2145_v12 }
 0x2da   :  { %v2082_v14 = vpop.f32.mrf.mxu2 }
 0x2e2   :  { %v2093_v15 = vpop.f32.mrf.mxu3 }
 0x2e3   :  { %v2094_v16 = vadd.f32 %v2093_v15, %v1714_v29 }
 0x2e5   :  { %v2139_v59 = vadd.f32 %v2094_v16, %v1394_v17 }
 0x2e7   :  { %v2146_v18 = vmax.f32 %v2139_v59, 0.0 }
 0x2e9   :  { %2153 = vst [vmem:[#allocation4 + $0x18] sm:$0xff] %v2146_v18 }
 0x2ea   :  { %v2095_v19 = vpop.f32.mrf.mxu3 }
 0x2eb   :  { %v2119_v20 = vpop.f32.mrf.mxu1 }
 0x2ec   :  { %v2120_v21 = vadd.f32 %v2119_v20, %v1740_v57 }
 0x2ee   :  { %v2141_v22 = vadd.f32 %v2120_v21, %v1396_v7 }
 0x2f0   :  { %v2148_v23 = vmax.f32 %v2141_v22, 0.0 }
 0x2f2   :  { %v2132_v5 = vpop.f32.mrf.mxu2  ;;  %2155 = vst [vmem:[#allocation4 + $0x28] sm:$0xff] %v2148_v23 }
 0x2f3   :  { %v2133_v24 = vadd.f32 %v2132_v5, %v1753_v61  ;;  %v2121_v25 = vpop.f32.mrf.mxu1 }
 0x2f5   :  { %v2142_v17 = vadd.f32 %v2133_v24, %v1397_v34 }
 0x2f7   :  { %v2149_v26 = vmax.f32 %v2142_v17, 0.0 }
 0x2f9   :  { %2156 = vst.msk [vmem:[#allocation4 + $0x30] sm:$0xff] %vm456_vm0, %v2149_v26 }
 0x2fa   :  { %v2134_v7 = vpop.f32.mrf.mxu2  ;;  %2178 = dma.vmem_to_hbm [thread:$0]  %s2174_s23, 896, %s2176_s25, [#allocation5]  }
 0x2fb   :  { %3393 = dma.done.wait [#allocation3], 896  }
 0x2fc   :  { %3394 = vsyncadd [#allocation3], 4294966400 }
 0x2fd   :  { %3395 = dma.done.wait [#allocation5], 896  }
 0x2fe   :  { %3396 = vsyncadd [#allocation5], 4294966400 }
 0x2ff   :  { %2187 = vsyncpa [#allocation3], 1 }
 0x300   :  { %2188 = vsyncpa [#allocation5], 1 }

</bundles_post_ra>
